<compile_context>
chip_gen: v5e
topology: v5e:2x2
jax: 0.10.0
libtpu: 0.0.40
codegen_flags: <defaults>
</compile_context>

<pallas_src>
import jax
import jax.numpy as jnp
from jax import lax
from jax.experimental import pallas as pl
from jax.experimental.pallas import tpu as pltpu


_PADW = 8  # left/right sublane padding of the scratch -> 8-aligned stores


def dw_conv_kernel(x_ref, top_ref, bot_ref, wdw_ref, s1_ref, b1_ref,
                   wpw_ref, s2_ref, b2_ref, o_ref, pad_ref):
    # x_ref:   (1, TH, W, C)          row tile of the NHWC input
    # top_ref: (1, 1, W, C)           row just above the tile (clamped at edge)
    # bot_ref: (1, 1, W, C)           row just below the tile (clamped at edge)
    # wdw_ref: (3, 3, 1, C)           depthwise 3x3 weights (compute dtype)
    # s1/b1:   (1, C)   f32           folded BN1 scale / shift
    # wpw_ref: (C, Cout)              1x1 weights (bf16 on the MXU path)
    # s2/b2:   (1, Cout) f32          folded BN2 scale / shift
    # o_ref:   (1, TH, W, Cout)
    # pad_ref: (TH+2, W+2*_PADW, C)   scratch, compute dtype
    TH = x_ref.shape[1]
    W = x_ref.shape[2]
    C = x_ref.shape[3]
    Cout = o_ref.shape[3]
    cdt = pad_ref.dtype                       # depthwise compute dtype

    t = pl.program_id(1)
    n_t = pl.num_programs(1)

    # ---- assemble the padded tile: every store is 8-aligned on the sublane axis
    zcol = jnp.zeros((TH + 2, _PADW, C), cdt)
    pad_ref[:, 0:_PADW, :] = zcol                          # left zero columns
    pad_ref[:, _PADW + W:2 * _PADW + W, :] = zcol          # right zero columns
    pad_ref[1:TH + 1, _PADW:_PADW + W, :] = x_ref[0].astype(cdt)

    # Row halos: neighbouring row, or conv zero padding at the image boundary.
    @pl.when(t == 0)
    def _():
        pad_ref[0:1, _PADW:_PADW + W, :] = jnp.zeros((1, W, C), cdt)

    @pl.when(t > 0)
    def _():
        pad_ref[0:1, _PADW:_PADW + W, :] = top_ref[0].astype(cdt)

    @pl.when(t == n_t - 1)
    def _():
        pad_ref[TH + 1:TH + 2, _PADW:_PADW + W, :] = jnp.zeros((1, W, C), cdt)

    @pl.when(t < n_t - 1)
    def _():
        pad_ref[TH + 1:TH + 2, _PADW:_PADW + W, :] = bot_ref[0].astype(cdt)

    wdw = wdw_ref[...]                        # (3, 3, 1, C): each tap is a lane row
    wpw = wpw_ref[...]                        # (C, Cout)
    s1 = s1_ref[0]
    b1 = b1_ref[0]
    s2 = s2_ref[0]
    b2 = b2_ref[0]

    use_mxu = C * Cout > 1024                 # MXU only for real channel counts

    # Process the tile in 8-row sub-bands so live intermediates stay bounded.
    SB = 8 if TH % 8 == 0 else TH
    for s in range(TH // SB):
        r0 = s * SB
        # scratch rows r0 .. r0+SB+1  ==  tile rows r0-1 .. r0+SB (with halo)
        chunk = pad_ref[r0:r0 + SB + 2, :, :]              # (SB+2, W+16, C)

        # ---- depthwise 3x3, padding=1, groups=C: 9 broadcast MACs ----------
        acc = jnp.zeros((SB, W, C), cdt)
        for dy in range(3):
            band = chunk[dy:dy + SB]                       # (SB, W+16, C)
            for dx in range(3):
                lo = _PADW - 1 + dx
                acc = acc + band[:, lo:lo + W, :] * wdw[dy, dx]

        # ---- BN1 (folded) + ReLU in f32 -------------------------------------
        h = jnp.maximum(acc.astype(jnp.float32) * s1 + b1, 0.0)   # (SB, W, C)

        # ---- 1x1 conv (channel mixing) ---------------------------------------
        if use_mxu:
            # MXU, bf16 operands / f32 accumulate.  M = SB*W >= 128 for W >= 16.
            # TODO(synk): for W % 8 != 0 stages (28/14-wide decoder maps) the
            # reshape crosses (8,128) tiles and costs a relayout.
            y = jnp.dot(h.reshape(SB * W, C).astype(wpw.dtype), wpw,
                        preferred_element_type=jnp.float32).reshape(SB, W, Cout)
        else:
            # Tiny channel counts: the MXU tile would be mostly padding -> VPU.
            y = jnp.zeros((SB, W, Cout), jnp.float32)
            for c in range(C):
                y = y + h[:, :, c:c + 1] * wpw[c]

        # ---- BN2 (folded) + ReLU, store this sub-band ------------------------
        y = jnp.maximum(y * s2 + b2, 0.0)
        o_ref[0, r0:r0 + SB, :, :] = y.astype(o_ref.dtype)


def _select_compute_dtype():
    """bf16 depthwise MACs on chips with a bf16 VPU (v6e/v7x); f32 otherwise."""
    try:
        kind = jax.devices()[0].device_kind.lower()
    except Exception:
        return jnp.float32
    if any(tag in kind for tag in ("v6", "v7", "7x")):
        return jnp.bfloat16
    return jnp.float32


def _vmem_budget_and_limit():
    """Generation-aware VMEM sizing: (per-step tile budget, vmem_limit_bytes)."""
    try:
        cap = int(pltpu.get_tpu_info().vmem_capacity_bytes)
    except Exception:
        cap = None
    if cap is not None and cap >= (96 << 20):      # v5e / v6e: 128 MiB physical
        budget, limit = 24 << 20, 96 << 20
    else:                                          # v7x (64 MiB) or unknown
        budget, limit = 10 << 20, 32 << 20
    if cap is not None:
        limit = min(limit, cap)
        budget = min(budget, max(cap // 3, 2 << 20))
    return budget, limit


def _choose_tile_h(H, W, C, Cout, n_batch, budget_bytes, cdt_bytes):
    """Largest row tile TH dividing H whose per-step VMEM footprint (pipelined
    I/O tiles + padded scratch + compiler-held sub-band intermediates) fits the
    budget.  Prefers 8-aligned tiles, >= 2 tiles per image, and an even total
    grid step count (v7x has 2 TensorCores sharing the parallel axes)."""
    cands = [th for th in range(1, H + 1) if H % th == 0]
    WP = W + 2 * _PADW

    def footprint(th):
        sb = 8 if th % 8 == 0 else th
        io = 4 * (2 * th * W * C + 2 * th * W * Cout + 4 * W * C)  # dbl-buffered f32 DMA tiles
        scr = cdt_bytes * (th + 2) * WP * C                        # padded scratch
        live = (cdt_bytes * (sb + 2) * WP * C                      # chunk
                + cdt_bytes * sb * W * C                           # dw accumulator
                + 4 * sb * W * C                                   # h (f32)
                + 2 * sb * W * C                                   # matmul operand copy
                + 4 * sb * W * Cout)                               # y (f32)
        wts = 8 * (C * Cout + 11 * C + 2 * Cout)                   # weights / BN
        return io + scr + live + wts

    fits = [th for th in cands if footprint(th) <= budget_bytes]
    if not fits:  # still respect the budget as well as possible
        fits = [min(cands, key=footprint)]

    def score(th):
        return (th % 8 == 0,                       # unmasked row-slab stores
                H // th >= 2,                      # keep pipeline / megacore busy
                (n_batch * (H // th)) % 2 == 0,    # even step count (v7x: 2 TCs)
                th)                                # then: biggest tile

    return max(fits, key=score)


def dw_conv_forward_nhwc(x_nhwc, params, compute_dtype=None):
    """Fused DW_Conv forward; activations in NHWC (preferred TPU layout)."""
    wdw, s1, b1, wpw, s2, b2 = params
    N, H, W, C = x_nhwc.shape
    Cout = wpw.shape[1]

    if compute_dtype is None:
        compute_dtype = _select_compute_dtype()
    cdt = jnp.dtype(compute_dtype)
    budget, vmem_limit = _vmem_budget_and_limit()
    TH = _choose_tile_h(H, W, C, Cout, N, budget, cdt.itemsize)
    n_t = H // TH

    use_mxu = C * Cout > 1024
    mm_dtype = jnp.bfloat16 if use_mxu else jnp.float32
    wdw4 = wdw.reshape(3, 3, 1, C).astype(compute_dtype)   # lane-row taps
    wpw2 = wpw.astype(mm_dtype)

    out = pl.pallas_call(
        dw_conv_kernel,
        out_shape=jax.ShapeDtypeStruct((N, H, W, Cout), x_nhwc.dtype),
        grid_spec=pltpu.PrefetchScalarGridSpec(
            num_scalar_prefetch=0,
            grid=(N, n_t),
            in_specs=[
                # row tile
                pl.BlockSpec((1, TH, W, C), lambda n, t: (n, t, 0, 0)),
                # halo rows above / below (dim-1 block size 1 => element row
                # index); clamped at the image edge, zeroed in-kernel there.
                pl.BlockSpec((1, 1, W, C),
                             lambda n, t: (n, jnp.maximum(t * TH - 1, 0), 0, 0)),
                pl.BlockSpec((1, 1, W, C),
                             lambda n, t: (n, jnp.minimum((t + 1) * TH, H - 1), 0, 0)),
                pl.BlockSpec((3, 3, 1, C), lambda n, t: (0, 0, 0, 0)),
                pl.BlockSpec((1, C), lambda n, t: (0, 0)),
                pl.BlockSpec((1, C), lambda n, t: (0, 0)),
                pl.BlockSpec((C, Cout), lambda n, t: (0, 0)),
                pl.BlockSpec((1, Cout), lambda n, t: (0, 0)),
                pl.BlockSpec((1, Cout), lambda n, t: (0, 0)),
            ],
            out_specs=pl.BlockSpec((1, TH, W, Cout), lambda n, t: (n, t, 0, 0)),
            scratch_shapes=[
                pltpu.VMEM((TH + 2, W + 2 * _PADW, C), compute_dtype)],
        ),
        compiler_params=pltpu.CompilerParams(
            dimension_semantics=("parallel", "parallel"),
            vmem_limit_bytes=vmem_limit,
        ),
    )(x_nhwc, x_nhwc, x_nhwc, wdw4,
      s1.reshape(1, C).astype(jnp.float32), b1.reshape(1, C).astype(jnp.float32),
      wpw2, s2.reshape(1, Cout).astype(jnp.float32),
      b2.reshape(1, Cout).astype(jnp.float32))
    return out


def dw_conv_forward(x_nchw, params, compute_dtype=None):
    """PyTorch-parity entry point (NCHW in / NCHW out).

    In a full network, keep activations NHWC end-to-end and call
    dw_conv_forward_nhwc directly: each of these transposes is an extra full
    HBM read+write pass that can cost as much as the fused kernel itself.
    """
    x = jnp.transpose(x_nchw, (0, 2, 3, 1))      # NCHW -> NHWC
    y = dw_conv_forward_nhwc(x, params, compute_dtype=compute_dtype)
    return jnp.transpose(y, (0, 3, 1, 2))        # NHWC -> NCHW


def dw_conv_reference(x_nchw, params):
    """Pure-JAX (XLA) reference for correctness checking."""
    wdw, s1, b1, wpw, s2, b2 = params
    C = x_nchw.shape[1]
    w_dw = jnp.transpose(wdw, (2, 0, 1))[:, None, :, :]        # (C,1,3,3)
    h = lax.conv_general_dilated(x_nchw, w_dw, (1, 1), 'SAME',
                                 dimension_numbers=('NCHW', 'OIHW', 'NCHW'),
                                 feature_group_count=C,
                                 precision=lax.Precision.HIGHEST)
    h = jnp.maximum(h * s1[None, :, None, None] + b1[None, :, None, None], 0.0)
    w_pw = jnp.transpose(wpw, (1, 0))[:, :, None, None]        # (Cout,C,1,1)
    h2 = lax.conv_general_dilated(h, w_pw, (1, 1), 'VALID',
                                  dimension_numbers=('NCHW', 'OIHW', 'NCHW'),
                                  precision=lax.Precision.HIGHEST)
    return jnp.maximum(h2 * s2[None, :, None, None] + b2[None, :, None, None], 0.0)


def make_params(key, c_in, c_out):
    ks = jax.random.split(key, 10)
    eps = 1e-5
    # depthwise 3x3 weight, stored as (3, 3, C)  (PyTorch: (C,1,3,3))
    wdw = 0.2 * jax.random.normal(ks[0], (3, 3, c_in), jnp.float32)
    # pointwise 1x1 weight, stored as (C, Cout)  (PyTorch: (Cout,C,1,1))
    wpw = 0.2 * jax.random.normal(ks[1], (c_in, c_out), jnp.float32)
    # BN1 params (inference form), folded into scale/shift
    g1 = 1.0 + 0.1 * jax.random.normal(ks[2], (c_in,), jnp.float32)
    be1 = 0.1 * jax.random.normal(ks[3], (c_in,), jnp.float32)
    m1 = 0.1 * jax.random.normal(ks[4], (c_in,), jnp.float32)
    v1 = 1.0 + 0.1 * jnp.abs(jax.random.normal(ks[5], (c_in,), jnp.float32))
    s1 = g1 / jnp.sqrt(v1 + eps)
    b1 = be1 - m1 * s1
    # BN2 params
    g2 = 1.0 + 0.1 * jax.random.normal(ks[6], (c_out,), jnp.float32)
    be2 = 0.1 * jax.random.normal(ks[7], (c_out,), jnp.float32)
    m2 = 0.1 * jax.random.normal(ks[8], (c_out,), jnp.float32)
    v2 = 1.0 + 0.1 * jnp.abs(jax.random.normal(ks[9], (c_out,), jnp.float32))
    s2 = g2 / jnp.sqrt(v2 + eps)
    b2 = be2 - m2 * s2
    return (wdw, s1, b1, wpw, s2, b2)


if __name__ == "__main__":
    key = jax.random.PRNGKey(0)
    k_x, k_p = jax.random.split(key)

    N, C_in, H, W = 2, 4, 16, 16
    C_out = 8

    x = jax.random.normal(k_x, (N, C_in, H, W), jnp.float32)   # NCHW like PyTorch
    params = make_params(k_p, C_in, C_out)

    cdt = _select_compute_dtype()
    y = jax.block_until_ready(dw_conv_forward(x, params, compute_dtype=cdt))
    y_ref = jax.block_until_ready(dw_conv_reference(x, params))

    assert y.shape == (N, C_out, H, W), y.shape
    err = float(jnp.max(jnp.abs(y - y_ref)))
    if cdt == jnp.float32:
        ok = jnp.allclose(y, y_ref, atol=1e-5, rtol=1e-5)
    else:
        # bf16 depthwise MACs on v6e/v7x: parity vs the f32 HIGHEST-precision
        # reference is necessarily looser (bf16 in / bf16 accumulate).
        ok = jnp.allclose(y, y_ref, atol=1e-1, rtol=1e-1)
    assert ok, f"max abs err = {err}"

    print("KERNEL_OK")
</pallas_src>

<mosaic_0001>
module attributes {stable_mosaic.version = 11 : i64} {
  func.func @dw_conv_kernel(%arg0: i32, %arg1: i32, %arg2: memref<1x8x16x4xf32, #tpu.memory_space<vmem>>, %arg3: memref<1x1x16x4xf32, #tpu.memory_space<vmem>>, %arg4: memref<1x1x16x4xf32, #tpu.memory_space<vmem>>, %arg5: memref<3x3x1x4xf32, #tpu.memory_space<vmem>>, %arg6: memref<1x4xf32, #tpu.memory_space<vmem>>, %arg7: memref<1x4xf32, #tpu.memory_space<vmem>>, %arg8: memref<4x8xf32, #tpu.memory_space<vmem>>, %arg9: memref<1x8xf32, #tpu.memory_space<vmem>>, %arg10: memref<1x8xf32, #tpu.memory_space<vmem>>, %arg11: memref<1x8x16x8xf32, #tpu.memory_space<vmem>>, %arg12: memref<10x32x4xf32, #tpu.memory_space<vmem>>) attributes {dimension_semantics = [#tpu.dimension_semantics<parallel>, #tpu.dimension_semantics<parallel>], iteration_bounds = array<i64: 2, 2>, scalar_prefetch = 0 : i64, scratch_operands = 1 : i64, tpu.core_type = #tpu.core_type<tc>, window_params = [{transform_indices = @transform_0, window_bounds = array<i64: 1, 8, 16, 4>}, {transform_indices = @transform_1, window_bounds = array<i64: 1, 1, 16, 4>}, {transform_indices = @transform_2, window_bounds = array<i64: 1, 1, 16, 4>}, {pipeline_mode = #tpu.pipeline_mode<synchronous>, transform_indices = @transform_3, window_bounds = array<i64: 3, 3, 1, 4>}, {pipeline_mode = #tpu.pipeline_mode<synchronous>, transform_indices = @transform_4, window_bounds = array<i64: 1, 4>}, {pipeline_mode = #tpu.pipeline_mode<synchronous>, transform_indices = @transform_5, window_bounds = array<i64: 1, 4>}, {pipeline_mode = #tpu.pipeline_mode<synchronous>, transform_indices = @transform_6, window_bounds = array<i64: 4, 8>}, {pipeline_mode = #tpu.pipeline_mode<synchronous>, transform_indices = @transform_7, window_bounds = array<i64: 1, 8>}, {pipeline_mode = #tpu.pipeline_mode<synchronous>, transform_indices = @transform_8, window_bounds = array<i64: 1, 8>}, {transform_indices = @transform_9, window_bounds = array<i64: 1, 8, 16, 8>}]} {
    %cst = arith.constant 0.000000e+00 : f32
    %0 = vector.broadcast %cst : f32 to vector<10x8x4xf32>
    %c0 = arith.constant 0 : index
    %c0_0 = arith.constant 0 : index
    %c0_1 = arith.constant 0 : index
    %1 = vector.load %arg12[%c0, %c0_0, %c0_1] : memref<10x32x4xf32, #tpu.memory_space<vmem>>, vector<10x8x4xf32>
    tpu.vector_store %arg12[%c0, %c0_0, %c0_1], %0 {strides = array<i32>} : memref<10x32x4xf32, #tpu.memory_space<vmem>>, vector<10x8x4xf32>,
    %c0_2 = arith.constant 0 : index
    %c24 = arith.constant 24 : index
    %c0_3 = arith.constant 0 : index
    %2 = vector.load %arg12[%c0_2, %c24, %c0_3] : memref<10x32x4xf32, #tpu.memory_space<vmem>>, vector<10x8x4xf32>
    tpu.vector_store %arg12[%c0_2, %c24, %c0_3], %0 {strides = array<i32>} : memref<10x32x4xf32, #tpu.memory_space<vmem>>, vector<10x8x4xf32>,
    %c0_4 = arith.constant 0 : index
    %c0_5 = arith.constant 0 : index
    %c0_6 = arith.constant 0 : index
    %c0_7 = arith.constant 0 : index
    %3 = vector.load %arg2[%c0_4, %c0_5, %c0_6, %c0_7] : memref<1x8x16x4xf32, #tpu.memory_space<vmem>>, vector<1x8x16x4xf32>
    %4 = vector.shape_cast %3 : vector<1x8x16x4xf32> to vector<8x16x4xf32>
    %c1 = arith.constant 1 : index
    %c8 = arith.constant 8 : index
    %c0_8 = arith.constant 0 : index
    %5 = vector.load %arg12[%c1, %c8, %c0_8] : memref<10x32x4xf32, #tpu.memory_space<vmem>>, vector<8x16x4xf32>
    tpu.vector_store %arg12[%c1, %c8, %c0_8], %4 {strides = array<i32>} : memref<10x32x4xf32, #tpu.memory_space<vmem>>, vector<8x16x4xf32>,
    %c0_i32 = arith.constant 0 : i32
    %6 = arith.cmpi eq, %arg1, %c0_i32 : i32
    %7 = arith.extui %6 : i1 to i32
    %c0_i32_9 = arith.constant 0 : i32
    %8 = arith.cmpi ne, %7, %c0_i32_9 : i32
    scf.if %8 {
      %cst_40 = arith.constant 0.000000e+00 : f32
      %148 = vector.broadcast %cst_40 : f32 to vector<1x16x4xf32>
      %c0_41 = arith.constant 0 : index
      %c8_42 = arith.constant 8 : index
      %c0_43 = arith.constant 0 : index
      %149 = vector.load %arg12[%c0_41, %c8_42, %c0_43] : memref<10x32x4xf32, #tpu.memory_space<vmem>>, vector<1x16x4xf32>
      tpu.vector_store %arg12[%c0_41, %c8_42, %c0_43], %148 {strides = array<i32>} : memref<10x32x4xf32, #tpu.memory_space<vmem>>, vector<1x16x4xf32>,
    } else {
    }
    %c0_i32_10 = arith.constant 0 : i32
    %9 = arith.cmpi sgt, %arg1, %c0_i32_10 : i32
    %10 = arith.extui %9 : i1 to i32
    %c0_i32_11 = arith.constant 0 : i32
    %11 = arith.cmpi ne, %10, %c0_i32_11 : i32
    scf.if %11 {
      %c0_40 = arith.constant 0 : index
      %c0_41 = arith.constant 0 : index
      %c0_42 = arith.constant 0 : index
      %c0_43 = arith.constant 0 : index
      %148 = vector.load %arg3[%c0_40, %c0_41, %c0_42, %c0_43] : memref<1x1x16x4xf32, #tpu.memory_space<vmem>>, vector<1x1x16x4xf32>
      %149 = vector.shape_cast %148 : vector<1x1x16x4xf32> to vector<1x16x4xf32>
      %c0_44 = arith.constant 0 : index
      %c8_45 = arith.constant 8 : index
      %c0_46 = arith.constant 0 : index
      %150 = vector.load %arg12[%c0_44, %c8_45, %c0_46] : memref<10x32x4xf32, #tpu.memory_space<vmem>>, vector<1x16x4xf32>
      tpu.vector_store %arg12[%c0_44, %c8_45, %c0_46], %149 {strides = array<i32>} : memref<10x32x4xf32, #tpu.memory_space<vmem>>, vector<1x16x4xf32>,
    } else {
    }
    %c1_i32 = arith.constant 1 : i32
    %12 = arith.cmpi eq, %arg1, %c1_i32 : i32
    %13 = arith.extui %12 : i1 to i32
    %c0_i32_12 = arith.constant 0 : i32
    %14 = arith.cmpi ne, %13, %c0_i32_12 : i32
    scf.if %14 {
      %cst_40 = arith.constant 0.000000e+00 : f32
      %148 = vector.broadcast %cst_40 : f32 to vector<1x16x4xf32>
      %c9 = arith.constant 9 : index
      %c8_41 = arith.constant 8 : index
      %c0_42 = arith.constant 0 : index
      %149 = vector.load %arg12[%c9, %c8_41, %c0_42] : memref<10x32x4xf32, #tpu.memory_space<vmem>>, vector<1x16x4xf32>
      tpu.vector_store %arg12[%c9, %c8_41, %c0_42], %148 {strides = array<i32>} : memref<10x32x4xf32, #tpu.memory_space<vmem>>, vector<1x16x4xf32>,
    } else {
    }
    %c1_i32_13 = arith.constant 1 : i32
    %15 = arith.cmpi slt, %arg1, %c1_i32_13 : i32
    %16 = arith.extui %15 : i1 to i32
    %c0_i32_14 = arith.constant 0 : i32
    %17 = arith.cmpi ne, %16, %c0_i32_14 : i32
    scf.if %17 {
      %c0_40 = arith.constant 0 : index
      %c0_41 = arith.constant 0 : index
      %c0_42 = arith.constant 0 : index
      %c0_43 = arith.constant 0 : index
      %148 = vector.load %arg4[%c0_40, %c0_41, %c0_42, %c0_43] : memref<1x1x16x4xf32, #tpu.memory_space<vmem>>, vector<1x1x16x4xf32>
      %149 = vector.shape_cast %148 : vector<1x1x16x4xf32> to vector<1x16x4xf32>
      %c9 = arith.constant 9 : index
      %c8_44 = arith.constant 8 : index
      %c0_45 = arith.constant 0 : index
      %150 = vector.load %arg12[%c9, %c8_44, %c0_45] : memref<10x32x4xf32, #tpu.memory_space<vmem>>, vector<1x16x4xf32>
      tpu.vector_store %arg12[%c9, %c8_44, %c0_45], %149 {strides = array<i32>} : memref<10x32x4xf32, #tpu.memory_space<vmem>>, vector<1x16x4xf32>,
    } else {
    }
    %c0_15 = arith.constant 0 : index
    %c0_16 = arith.constant 0 : index
    %c0_17 = arith.constant 0 : index
    %c0_18 = arith.constant 0 : index
    %18 = vector.load %arg5[%c0_15, %c0_16, %c0_17, %c0_18] : memref<3x3x1x4xf32, #tpu.memory_space<vmem>>, vector<3x3x1x4xf32>
    %c0_19 = arith.constant 0 : index
    %c0_20 = arith.constant 0 : index
    %19 = vector.load %arg8[%c0_19, %c0_20] : memref<4x8xf32, #tpu.memory_space<vmem>>, vector<4x8xf32>
    %c0_21 = arith.constant 0 : index
    %c0_22 = arith.constant 0 : index
    %20 = vector.load %arg6[%c0_21, %c0_22] : memref<1x4xf32, #tpu.memory_space<vmem>>, vector<1x4xf32>
    %21 = vector.shape_cast %20 : vector<1x4xf32> to vector<4xf32>
    %c0_23 = arith.constant 0 : index
    %c0_24 = arith.constant 0 : index
    %22 = vector.load %arg7[%c0_23, %c0_24] : memref<1x4xf32, #tpu.memory_space<vmem>>, vector<1x4xf32>
    %23 = vector.shape_cast %22 : vector<1x4xf32> to vector<4xf32>
    %c0_25 = arith.constant 0 : index
    %c0_26 = arith.constant 0 : index
    %24 = vector.load %arg9[%c0_25, %c0_26] : memref<1x8xf32, #tpu.memory_space<vmem>>, vector<1x8xf32>
    %25 = vector.shape_cast %24 : vector<1x8xf32> to vector<8xf32>
    %c0_27 = arith.constant 0 : index
    %c0_28 = arith.constant 0 : index
    %26 = vector.load %arg10[%c0_27, %c0_28] : memref<1x8xf32, #tpu.memory_space<vmem>>, vector<1x8xf32>
    %27 = vector.shape_cast %26 : vector<1x8xf32> to vector<8xf32>
    %c0_29 = arith.constant 0 : index
    %c0_30 = arith.constant 0 : index
    %c0_31 = arith.constant 0 : index
    %28 = vector.load %arg12[%c0_29, %c0_30, %c0_31] : memref<10x32x4xf32, #tpu.memory_space<vmem>>, vector<10x32x4xf32>
    %cst_32 = arith.constant 0.000000e+00 : f32
    %29 = vector.broadcast %cst_32 : f32 to vector<8x16x4xf32>
    %30 = vector.extract_strided_slice %28 {offsets = [0, 0, 0], sizes = [8, 32, 4], strides = [1, 1, 1]} : vector<10x32x4xf32> to vector<8x32x4xf32>
    %31 = vector.extract_strided_slice %30 {offsets = [0, 7, 0], sizes = [8, 16, 4], strides = [1, 1, 1]} : vector<8x32x4xf32> to vector<8x16x4xf32>
    %32 = vector.extract_strided_slice %18 {offsets = [0, 0, 0, 0], sizes = [1, 1, 1, 4], strides = [1, 1, 1, 1]} : vector<3x3x1x4xf32> to vector<1x1x1x4xf32>
    %33 = vector.shape_cast %32 : vector<1x1x1x4xf32> to vector<1x4xf32>
    %34 = vector.shape_cast %33 : vector<1x4xf32> to vector<1x1x4xf32>
    %35 = vector.broadcast %34 : vector<1x1x4xf32> to vector<8x16x4xf32>
    %36 = arith.mulf %31, %35 : vector<8x16x4xf32>
    %37 = arith.addf %29, %36 : vector<8x16x4xf32>
    %38 = vector.extract_strided_slice %30 {offsets = [0, 8, 0], sizes = [8, 16, 4], strides = [1, 1, 1]} : vector<8x32x4xf32> to vector<8x16x4xf32>
    %39 = vector.extract_strided_slice %18 {offsets = [0, 1, 0, 0], sizes = [1, 1, 1, 4], strides = [1, 1, 1, 1]} : vector<3x3x1x4xf32> to vector<1x1x1x4xf32>
    %40 = vector.shape_cast %39 : vector<1x1x1x4xf32> to vector<1x4xf32>
    %41 = vector.shape_cast %40 : vector<1x4xf32> to vector<1x1x4xf32>
    %42 = vector.broadcast %41 : vector<1x1x4xf32> to vector<8x16x4xf32>
    %43 = arith.mulf %38, %42 : vector<8x16x4xf32>
    %44 = arith.addf %37, %43 : vector<8x16x4xf32>
    %45 = vector.extract_strided_slice %30 {offsets = [0, 9, 0], sizes = [8, 16, 4], strides = [1, 1, 1]} : vector<8x32x4xf32> to vector<8x16x4xf32>
    %46 = vector.extract_strided_slice %18 {offsets = [0, 2, 0, 0], sizes = [1, 1, 1, 4], strides = [1, 1, 1, 1]} : vector<3x3x1x4xf32> to vector<1x1x1x4xf32>
    %47 = vector.shape_cast %46 : vector<1x1x1x4xf32> to vector<1x4xf32>
    %48 = vector.shape_cast %47 : vector<1x4xf32> to vector<1x1x4xf32>
    %49 = vector.broadcast %48 : vector<1x1x4xf32> to vector<8x16x4xf32>
    %50 = arith.mulf %45, %49 : vector<8x16x4xf32>
    %51 = arith.addf %44, %50 : vector<8x16x4xf32>
    %52 = vector.extract_strided_slice %28 {offsets = [1, 0, 0], sizes = [8, 32, 4], strides = [1, 1, 1]} : vector<10x32x4xf32> to vector<8x32x4xf32>
    %53 = vector.extract_strided_slice %52 {offsets = [0, 7, 0], sizes = [8, 16, 4], strides = [1, 1, 1]} : vector<8x32x4xf32> to vector<8x16x4xf32>
    %54 = vector.extract_strided_slice %18 {offsets = [1, 0, 0, 0], sizes = [1, 1, 1, 4], strides = [1, 1, 1, 1]} : vector<3x3x1x4xf32> to vector<1x1x1x4xf32>
    %55 = vector.shape_cast %54 : vector<1x1x1x4xf32> to vector<1x4xf32>
    %56 = vector.shape_cast %55 : vector<1x4xf32> to vector<1x1x4xf32>
    %57 = vector.broadcast %56 : vector<1x1x4xf32> to vector<8x16x4xf32>
    %58 = arith.mulf %53, %57 : vector<8x16x4xf32>
    %59 = arith.addf %51, %58 : vector<8x16x4xf32>
    %60 = vector.extract_strided_slice %52 {offsets = [0, 8, 0], sizes = [8, 16, 4], strides = [1, 1, 1]} : vector<8x32x4xf32> to vector<8x16x4xf32>
    %61 = vector.extract_strided_slice %18 {offsets = [1, 1, 0, 0], sizes = [1, 1, 1, 4], strides = [1, 1, 1, 1]} : vector<3x3x1x4xf32> to vector<1x1x1x4xf32>
    %62 = vector.shape_cast %61 : vector<1x1x1x4xf32> to vector<1x4xf32>
    %63 = vector.shape_cast %62 : vector<1x4xf32> to vector<1x1x4xf32>
    %64 = vector.broadcast %63 : vector<1x1x4xf32> to vector<8x16x4xf32>
    %65 = arith.mulf %60, %64 : vector<8x16x4xf32>
    %66 = arith.addf %59, %65 : vector<8x16x4xf32>
    %67 = vector.extract_strided_slice %52 {offsets = [0, 9, 0], sizes = [8, 16, 4], strides = [1, 1, 1]} : vector<8x32x4xf32> to vector<8x16x4xf32>
    %68 = vector.extract_strided_slice %18 {offsets = [1, 2, 0, 0], sizes = [1, 1, 1, 4], strides = [1, 1, 1, 1]} : vector<3x3x1x4xf32> to vector<1x1x1x4xf32>
    %69 = vector.shape_cast %68 : vector<1x1x1x4xf32> to vector<1x4xf32>
    %70 = vector.shape_cast %69 : vector<1x4xf32> to vector<1x1x4xf32>
    %71 = vector.broadcast %70 : vector<1x1x4xf32> to vector<8x16x4xf32>
    %72 = arith.mulf %67, %71 : vector<8x16x4xf32>
    %73 = arith.addf %66, %72 : vector<8x16x4xf32>
    %74 = vector.extract_strided_slice %28 {offsets = [2, 0, 0], sizes = [8, 32, 4], strides = [1, 1, 1]} : vector<10x32x4xf32> to vector<8x32x4xf32>
    %75 = vector.extract_strided_slice %74 {offsets = [0, 7, 0], sizes = [8, 16, 4], strides = [1, 1, 1]} : vector<8x32x4xf32> to vector<8x16x4xf32>
    %76 = vector.extract_strided_slice %18 {offsets = [2, 0, 0, 0], sizes = [1, 1, 1, 4], strides = [1, 1, 1, 1]} : vector<3x3x1x4xf32> to vector<1x1x1x4xf32>
    %77 = vector.shape_cast %76 : vector<1x1x1x4xf32> to vector<1x4xf32>
    %78 = vector.shape_cast %77 : vector<1x4xf32> to vector<1x1x4xf32>
    %79 = vector.broadcast %78 : vector<1x1x4xf32> to vector<8x16x4xf32>
    %80 = arith.mulf %75, %79 : vector<8x16x4xf32>
    %81 = arith.addf %73, %80 : vector<8x16x4xf32>
    %82 = vector.extract_strided_slice %74 {offsets = [0, 8, 0], sizes = [8, 16, 4], strides = [1, 1, 1]} : vector<8x32x4xf32> to vector<8x16x4xf32>
    %83 = vector.extract_strided_slice %18 {offsets = [2, 1, 0, 0], sizes = [1, 1, 1, 4], strides = [1, 1, 1, 1]} : vector<3x3x1x4xf32> to vector<1x1x1x4xf32>
    %84 = vector.shape_cast %83 : vector<1x1x1x4xf32> to vector<1x4xf32>
    %85 = vector.shape_cast %84 : vector<1x4xf32> to vector<1x1x4xf32>
    %86 = vector.broadcast %85 : vector<1x1x4xf32> to vector<8x16x4xf32>
    %87 = arith.mulf %82, %86 : vector<8x16x4xf32>
    %88 = arith.addf %81, %87 : vector<8x16x4xf32>
    %89 = vector.extract_strided_slice %74 {offsets = [0, 9, 0], sizes = [8, 16, 4], strides = [1, 1, 1]} : vector<8x32x4xf32> to vector<8x16x4xf32>
    %90 = vector.extract_strided_slice %18 {offsets = [2, 2, 0, 0], sizes = [1, 1, 1, 4], strides = [1, 1, 1, 1]} : vector<3x3x1x4xf32> to vector<1x1x1x4xf32>
    %91 = vector.shape_cast %90 : vector<1x1x1x4xf32> to vector<1x4xf32>
    %92 = vector.shape_cast %91 : vector<1x4xf32> to vector<1x1x4xf32>
    %93 = vector.broadcast %92 : vector<1x1x4xf32> to vector<8x16x4xf32>
    %94 = arith.mulf %89, %93 : vector<8x16x4xf32>
    %95 = arith.addf %88, %94 : vector<8x16x4xf32>
    %96 = vector.shape_cast %21 : vector<4xf32> to vector<1x1x4xf32>
    %97 = vector.broadcast %96 : vector<1x1x4xf32> to vector<8x16x4xf32>
    %98 = arith.mulf %95, %97 : vector<8x16x4xf32>
    %99 = vector.shape_cast %23 : vector<4xf32> to vector<1x1x4xf32>
    %100 = vector.broadcast %99 : vector<1x1x4xf32> to vector<8x16x4xf32>
    %101 = arith.addf %98, %100 : vector<8x16x4xf32>
    %cst_33 = arith.constant 0.000000e+00 : f32
    %102 = vector.broadcast %cst_33 : f32 to vector<8x16x4xf32>
    %103 = arith.maximumf %101, %102 : vector<8x16x4xf32>
    %cst_34 = arith.constant 0.000000e+00 : f32
    %104 = vector.broadcast %cst_34 : f32 to vector<8x16x8xf32>
    %105 = vector.extract_strided_slice %103 {offsets = [0, 0, 0], sizes = [8, 16, 1], strides = [1, 1, 1]} : vector<8x16x4xf32> to vector<8x16x1xf32>
    %106 = vector.extract_strided_slice %19 {offsets = [0, 0], sizes = [1, 8], strides = [1, 1]} : vector<4x8xf32> to vector<1x8xf32>
    %107 = vector.shape_cast %106 : vector<1x8xf32> to vector<8xf32>
    %108 = vector.shape_cast %107 : vector<8xf32> to vector<1x1x8xf32>
    %109 = vector.broadcast %105 : vector<8x16x1xf32> to vector<8x16x8xf32>
    %110 = vector.broadcast %108 : vector<1x1x8xf32> to vector<8x16x8xf32>
    %111 = arith.mulf %109, %110 : vector<8x16x8xf32>
    %112 = arith.addf %104, %111 : vector<8x16x8xf32>
    %113 = vector.extract_strided_slice %103 {offsets = [0, 0, 1], sizes = [8, 16, 1], strides = [1, 1, 1]} : vector<8x16x4xf32> to vector<8x16x1xf32>
    %114 = vector.extract_strided_slice %19 {offsets = [1, 0], sizes = [1, 8], strides = [1, 1]} : vector<4x8xf32> to vector<1x8xf32>
    %115 = vector.shape_cast %114 : vector<1x8xf32> to vector<8xf32>
    %116 = vector.shape_cast %115 : vector<8xf32> to vector<1x1x8xf32>
    %117 = vector.broadcast %113 : vector<8x16x1xf32> to vector<8x16x8xf32>
    %118 = vector.broadcast %116 : vector<1x1x8xf32> to vector<8x16x8xf32>
    %119 = arith.mulf %117, %118 : vector<8x16x8xf32>
    %120 = arith.addf %112, %119 : vector<8x16x8xf32>
    %121 = vector.extract_strided_slice %103 {offsets = [0, 0, 2], sizes = [8, 16, 1], strides = [1, 1, 1]} : vector<8x16x4xf32> to vector<8x16x1xf32>
    %122 = vector.extract_strided_slice %19 {offsets = [2, 0], sizes = [1, 8], strides = [1, 1]} : vector<4x8xf32> to vector<1x8xf32>
    %123 = vector.shape_cast %122 : vector<1x8xf32> to vector<8xf32>
    %124 = vector.shape_cast %123 : vector<8xf32> to vector<1x1x8xf32>
    %125 = vector.broadcast %121 : vector<8x16x1xf32> to vector<8x16x8xf32>
    %126 = vector.broadcast %124 : vector<1x1x8xf32> to vector<8x16x8xf32>
    %127 = arith.mulf %125, %126 : vector<8x16x8xf32>
    %128 = arith.addf %120, %127 : vector<8x16x8xf32>
    %129 = vector.extract_strided_slice %103 {offsets = [0, 0, 3], sizes = [8, 16, 1], strides = [1, 1, 1]} : vector<8x16x4xf32> to vector<8x16x1xf32>
    %130 = vector.extract_strided_slice %19 {offsets = [3, 0], sizes = [1, 8], strides = [1, 1]} : vector<4x8xf32> to vector<1x8xf32>
    %131 = vector.shape_cast %130 : vector<1x8xf32> to vector<8xf32>
    %132 = vector.shape_cast %131 : vector<8xf32> to vector<1x1x8xf32>
    %133 = vector.broadcast %129 : vector<8x16x1xf32> to vector<8x16x8xf32>
    %134 = vector.broadcast %132 : vector<1x1x8xf32> to vector<8x16x8xf32>
    %135 = arith.mulf %133, %134 : vector<8x16x8xf32>
    %136 = arith.addf %128, %135 : vector<8x16x8xf32>
    %137 = vector.shape_cast %25 : vector<8xf32> to vector<1x1x8xf32>
    %138 = vector.broadcast %137 : vector<1x1x8xf32> to vector<8x16x8xf32>
    %139 = arith.mulf %136, %138 : vector<8x16x8xf32>
    %140 = vector.shape_cast %27 : vector<8xf32> to vector<1x1x8xf32>
    %141 = vector.broadcast %140 : vector<1x1x8xf32> to vector<8x16x8xf32>
    %142 = arith.addf %139, %141 : vector<8x16x8xf32>
    %cst_35 = arith.constant 0.000000e+00 : f32
    %143 = vector.broadcast %cst_35 : f32 to vector<8x16x8xf32>
    %144 = arith.maximumf %142, %143 : vector<8x16x8xf32>
    %c0_36 = arith.constant 0 : index
    %c0_37 = arith.constant 0 : index
    %c0_38 = arith.constant 0 : index
    %c0_39 = arith.constant 0 : index
    %145 = vector.load %arg11[%c0_36, %c0_37, %c0_38, %c0_39] : memref<1x8x16x8xf32, #tpu.memory_space<vmem>>, vector<1x8x16x8xf32>
    %146 = vector.shape_cast %145 : vector<1x8x16x8xf32> to vector<8x16x8xf32>
    %147 = vector.shape_cast %144 : vector<8x16x8xf32> to vector<1x8x16x8xf32>
    tpu.vector_store %arg11[%c0_36, %c0_37, %c0_38, %c0_39], %147 {strides = array<i32>} : memref<1x8x16x8xf32, #tpu.memory_space<vmem>>, vector<1x8x16x8xf32>,
    return
  }
  func.func @transform_0(%arg0: i32, %arg1: i32) -> (i32, i32, i32, i32) {
    %c0_i32 = arith.constant 0 : i32
    %c0_i32_0 = arith.constant 0 : i32
    %c0_i32_1 = arith.constant 0 : i32
    return %arg0, %arg1, %c0_i32, %c0_i32_0 : i32, i32, i32, i32
  }
  func.func @transform_1(%arg0: i32, %arg1: i32) -> (i32, i32, i32, i32) {
    %c8_i32 = arith.constant 8 : i32
    %0 = arith.muli %arg1, %c8_i32 : i32
    %c1_i32 = arith.constant 1 : i32
    %1 = arith.subi %0, %c1_i32 : i32
    %c0_i32 = arith.constant 0 : i32
    %2 = arith.maxsi %1, %c0_i32 : i32
    %c0_i32_0 = arith.constant 0 : i32
    %c0_i32_1 = arith.constant 0 : i32
    %c0_i32_2 = arith.constant 0 : i32
    return %arg0, %2, %c0_i32_0, %c0_i32_1 : i32, i32, i32, i32
  }
  func.func @transform_2(%arg0: i32, %arg1: i32) -> (i32, i32, i32, i32) {
    %c1_i32 = arith.constant 1 : i32
    %0 = arith.addi %arg1, %c1_i32 : i32
    %c8_i32 = arith.constant 8 : i32
    %1 = arith.muli %0, %c8_i32 : i32
    %c15_i32 = arith.constant 15 : i32
    %2 = arith.minsi %1, %c15_i32 : i32
    %c0_i32 = arith.constant 0 : i32
    %c0_i32_0 = arith.constant 0 : i32
    %c0_i32_1 = arith.constant 0 : i32
    return %arg0, %2, %c0_i32, %c0_i32_0 : i32, i32, i32, i32
  }
  func.func @transform_3(%arg0: i32, %arg1: i32) -> (i32, i32, i32, i32) {
    %c0_i32 = arith.constant 0 : i32
    %c0_i32_0 = arith.constant 0 : i32
    %c0_i32_1 = arith.constant 0 : i32
    %c0_i32_2 = arith.constant 0 : i32
    %c0_i32_3 = arith.constant 0 : i32
    return %c0_i32, %c0_i32_0, %c0_i32_1, %c0_i32_2 : i32, i32, i32, i32
  }
  func.func @transform_4(%arg0: i32, %arg1: i32) -> (i32, i32) {
    %c0_i32 = arith.constant 0 : i32
    %c0_i32_0 = arith.constant 0 : i32
    %c0_i32_1 = arith.constant 0 : i32
    return %c0_i32, %c0_i32_0 : i32, i32
  }
  func.func @transform_5(%arg0: i32, %arg1: i32) -> (i32, i32) {
    %c0_i32 = arith.constant 0 : i32
    %c0_i32_0 = arith.constant 0 : i32
    %c0_i32_1 = arith.constant 0 : i32
    return %c0_i32, %c0_i32_0 : i32, i32
  }
  func.func @transform_6(%arg0: i32, %arg1: i32) -> (i32, i32) {
    %c0_i32 = arith.constant 0 : i32
    %c0_i32_0 = arith.constant 0 : i32
    %c0_i32_1 = arith.constant 0 : i32
    return %c0_i32, %c0_i32_0 : i32, i32
  }
  func.func @transform_7(%arg0: i32, %arg1: i32) -> (i32, i32) {
    %c0_i32 = arith.constant 0 : i32
    %c0_i32_0 = arith.constant 0 : i32
    %c0_i32_1 = arith.constant 0 : i32
    return %c0_i32, %c0_i32_0 : i32, i32
  }
  func.func @transform_8(%arg0: i32, %arg1: i32) -> (i32, i32) {
    %c0_i32 = arith.constant 0 : i32
    %c0_i32_0 = arith.constant 0 : i32
    %c0_i32_1 = arith.constant 0 : i32
    return %c0_i32, %c0_i32_0 : i32, i32
  }
  func.func @transform_9(%arg0: i32, %arg1: i32) -> (i32, i32, i32, i32) {
    %c0_i32 = arith.constant 0 : i32
    %c0_i32_0 = arith.constant 0 : i32
    %c0_i32_1 = arith.constant 0 : i32
    return %arg0, %arg1, %c0_i32, %c0_i32_0 : i32, i32, i32, i32
  }
}

</mosaic_0001>

<bundles_post_ra>
// kernel: tpu_custom_call.1
= control target key start
LH: loop header
LB: loop body
LE: loop exit
PB: predicated region body
PF: predicated region fallthrough
CT: control target
= control target key end

     0   :  { %s2690_s30 = smov 0   ;;  %s2692_s10 = smov 0   ;;  %s4416_s0 = inlined_call_operand.vmem [shape: f32[2,16,16,4], index: 0, kind: input, shape index: {}]   ;;  %s4417_s1 = inlined_call_operand.vmem [shape: f32[2,16,16,4], index: 1, kind: input, shape index: {}]   ;;  %s4418_s2 = inlined_call_operand.vmem [shape: f32[2,16,16,4], index: 2, kind: input, shape index: {}]   ;;  %s4419_s3 = inlined_call_operand.vmem [shape: f32[3,3,1,4], index: 3, kind: input, shape index: {}]   ;;  %s4420_s4 = inlined_call_operand.vmem [shape: f32[1,4], index: 4, kind: input, shape index: {}]   ;;  %s4421_s5 = inlined_call_operand.vmem [shape: f32[1,4], index: 5, kind: input, shape index: {}]   ;;  %s4422_s6 = inlined_call_operand.vmem [shape: f32[4,8], index: 6, kind: input, shape index: {}]   ;;  %s4423_s7 = inlined_call_operand.vmem [shape: f32[1,8], index: 7, kind: input, shape index: {}]   ;;  %s4424_s8 = inlined_call_operand.vmem [shape: f32[1,8], index: 8, kind: input, shape index: {}]   ;;  %s4425_s9 = inlined_call_operand.vmem [shape: f32[2,16,16,8], index: 9, kind: output, shape index: {}]  }
   0x1   :  { %s2694_s11 = smov 0   ;;  %s2696_s12 = smov 0  }
   0x2   :  { %s2698_s13 = smov 0  }
   0x3 LB: > { %s28_s14 = sadd.s32 1, %s2623_s11  ;;  %s31_s15 = sadd.s32 1, %s2627_s12  ;;  %s2631_s13 = sphi %s2698_s13, %s19_s13   ;;  %s2627_s12 = sphi %s2696_s12, %s4600_s12   ;;  %s2623_s11 = sphi %s2694_s11, %s4599_s11   ;;  %s2619_s10 = sphi %s2692_s10, %s4598_s10   ;;  %s2615_s30 = sphi %s2690_s30, %s4597_s30  }
   0x4   : > { %p29_p0 = scmp.ge.s32.totalorder %s28_s14, 2  ;;  %p2470_p1 = scmp.ge.s32.totalorder %s2631_s13, 1 }
   0x5   : > { %p373_p2 = scmp.lt.s32.totalorder %s2631_s13, 5 }
   0x6   : > { %s4602_s14 = smov (%p29_p0, %s28_s14), 0  ;;  %s4604_s15 = smov (!%p29_p0, %s31_s15), %s2627_s12 }
   0x7   : > { %p374_p3 = pnand %p2470_p1, %p373_p2  ;;  %p33_p4 = scmp.ge.s32.totalorder %s4604_s15, 2 }
   0x9   : > { %s4606_s15 = smov (%p33_p4, %s4604_s15), 0  ;;  %377 = sbr.rel (%p374_p3) target bundleno = 598 (0x256), region = 56 }
   0xe   : > { %vm501_vm0 = vcmask 31744   ;;  %s2471_s16 = sshll.u32 %s2615_s30, 3  ;;  %p446_p5 = scmp.lt.s32.totalorder %s2619_s10, 1  ;;  %v2633_v0 = vmov 0.0  }
   0xf   : > { %502 = vst.msk [vmem:[#allocation2] sm:$0xff] %vm501_vm0, %v2633_v0  ;;  %p448_p6 = scmp.lt.s32.totalorder %s2471_s16, 15  ;;  %s2476_s17 = sadd.s32 4294967295, %s2471_s16 }
  0x10   : > { %503 = vst.msk [vmem:[#allocation2 + $0x20] sm:$0xff] %vm501_vm0, %v2633_v0  ;;  %s4608_s10 = smov (!%p446_p5, %s2619_s10), 1  ;;  %p458_p7 = scmp.gt.s32.totalorder %s2476_s17, 0 }
  0x11   : > { %504 = vst.msk [vmem:[#allocation2 + $0x40] sm:$0xff] %vm501_vm0, %v2633_v0  ;;  %s449_s18 = scalar_select %p448_p6, %s2471_s16, 15 }
  0x12   : > { %505 = vst.msk [vmem:[#allocation2 + $0x60] sm:$0xff] %vm501_vm0, %v2633_v0  ;;  %s2727_s19 = sshll.u32 %s4608_s10, 5  ;;  %p2477_p8 = scmp.lt.s32.totalorder %s2476_s17, 15 }
  0x13   : > { %506 = vst.msk [vmem:[#allocation2 + $0x80] sm:$0xff] %vm501_vm0, %v2633_v0  ;;  %s2472_s20 = sshll.u32 %s449_s18, 1  ;;  %s2509_s22 = sadd.s32 8, %s2471_s16 }
  0x14   : > { %507 = vst.msk [vmem:[#allocation2 + $0xa0] sm:$0xff] %vm501_vm0, %v2633_v0  ;;  %s452_s21 = sadd.s32 %s2727_s19, %s2472_s20  ;;  %p2733_p9 = scmp.lt.s32.totalorder %s2509_s22, 15 }
  0x15   : > { %508 = vst.msk [vmem:[#allocation2 + $0xc0] sm:$0xff] %vm501_vm0, %v2633_v0  ;;  %s2474_s23 = sshll.u32 %s452_s21, 3  ;;  %p2496_p10 = scmp.ne.s32.totalorder %s2615_s30, 0 }
  0x16   : > { %509 = vst.msk [vmem:[#allocation2 + $0xe0] sm:$0xff] %vm501_vm0, %v2633_v0  ;;  %s2741_s27 = scalar_lea.vmem %s4425_s9, %s2474_s23  ;;  %s4610_s22 = smov (!%p2733_p9, %s2509_s22), 15 }
  0x17   : > { %510 = vst.msk [vmem:[#allocation2 + $0x100] sm:$0xff] %vm501_vm0, %v2633_v0  ;;  %s459_s28 = scalar_select %p458_p7, %s2476_s17, 0 }
  0x18   : > { %511 = vst.msk [vmem:[#allocation2 + $0x120] sm:$0xff] %vm501_vm0, %v2633_v0  ;;  %s4614_s22 = smov (!%p2733_p9, %s4610_s22), 15  ;;  %s2756_s16 = scalar_lea.vmem %s4416_s0, %s2474_s23 }
  0x19   : > { %512 = vst.msk [vmem:[#allocation2 + $0x18] sm:$0xff] %vm501_vm0, %v2633_v0  ;;  %s4612_s28 = smov (!%p2477_p8, %s459_s28), 15  ;;  %s2489_s17 = sshll.u32 %s4614_s22, 1  ;;  %v522_v1 = vld [vmem:[%s2756_s16] sm:$0xff]  ;;  %v523_v2 = vld [vmem:[%s2756_s16 + $0x8] sm:$0xff]  ;;  %v524_v3 = vld [vmem:[%s2756_s16 + $0x10] sm:$0xff] }
  0x1a   : > { %513 = vst.msk [vmem:[#allocation2 + $0x38] sm:$0xff] %vm501_vm0, %v2633_v0  ;;  %s2482_s18 = sshll.u32 %s4612_s28, 1  ;;  %s483_s24 = sadd.s32 %s2489_s17, %s2727_s19  ;;  %v525_v4 = vld [vmem:[%s2756_s16 + $0x18] sm:$0xff]  ;;  %v526_v5 = vld [vmem:[%s2756_s16 + $0x20] sm:$0xff]  ;;  %v527_v6 = vld [vmem:[%s2756_s16 + $0x28] sm:$0xff] }
  0x1b   : > { %514 = vst.msk [vmem:[#allocation2 + $0x58] sm:$0xff] %vm501_vm0, %v2633_v0  ;;  %s466_s20 = sadd.s32 %s2482_s18, %s2727_s19  ;;  %s2491_s28 = sshll.u32 %s483_s24, 3  ;;  %v528_v7 = vld [vmem:[%s2756_s16 + $0x30] sm:$0xff]  ;;  %v529_v8 = vld [vmem:[%s2756_s16 + $0x38] sm:$0xff]  ;;  %v530_v9 = vld [vmem:[%s2756_s16 + $0x40] sm:$0xff] }
  0x1c   : > { %515 = vst.msk [vmem:[#allocation2 + $0x78] sm:$0xff] %vm501_vm0, %v2633_v0  ;;  %s2484_s21 = sshll.u32 %s466_s20, 3  ;;  %s2772_s10 = scalar_lea.vmem %s4418_s2, %s2491_s28  ;;  %v531_v10 = vld [vmem:[%s2756_s16 + $0x48] sm:$0xff]  ;;  %v532_v11 = vld [vmem:[%s2756_s16 + $0x50] sm:$0xff]  ;;  %v533_v12 = vld [vmem:[%s2756_s16 + $0x58] sm:$0xff] }
  0x1d   : > { %516 = vst.msk [vmem:[#allocation2 + $0x98] sm:$0xff] %vm501_vm0, %v2633_v0  ;;  %s2766_s23 = scalar_lea.vmem %s4417_s1, %s2484_s21  ;;  %v534_v13 = vld [vmem:[%s2756_s16 + $0x60] sm:$0xff]  ;;  %v535_v14 = vld [vmem:[%s2756_s16 + $0x68] sm:$0xff]  ;;  %v536_v15 = vld [vmem:[%s2756_s16 + $0x70] sm:$0xff] }
  0x1e   : > { %517 = vst.msk [vmem:[#allocation2 + $0xb8] sm:$0xff] %vm501_vm0, %v2633_v0  ;;  %v537_v16 = vld [vmem:[%s2756_s16 + $0x78] sm:$0xff] }
  0x1f   : > { %518 = vst.msk [vmem:[#allocation2 + $0xd8] sm:$0xff] %vm501_vm0, %v2633_v0 }
  0x20   : > { %519 = vst.msk [vmem:[#allocation2 + $0xf8] sm:$0xff] %vm501_vm0, %v2633_v0 }
  0x21   : > { %520 = vst.msk [vmem:[#allocation2 + $0x118] sm:$0xff] %vm501_vm0, %v2633_v0 }
  0x22   : > { %521 = vst.msk [vmem:[#allocation2 + $0x138] sm:$0xff] %vm501_vm0, %v2633_v0 }
  0x23   : > { %539 = vst.msk [vmem:[#allocation2 + $0x28] sm:$0xff] %vm501_vm0, %v522_v1 }
  0x24   : > { %540 = vst.msk [vmem:[#allocation2 + $0x30] sm:$0xff] %vm501_vm0, %v523_v2 }
  0x25   : > { %541 = vst.msk [vmem:[#allocation2 + $0x48] sm:$0xff] %vm501_vm0, %v524_v3 }
  0x26   : > { %542 = vst.msk [vmem:[#allocation2 + $0x50] sm:$0xff] %vm501_vm0, %v525_v4 }
  0x27   : > { %543 = vst.msk [vmem:[#allocation2 + $0x68] sm:$0xff] %vm501_vm0, %v526_v5 }
  0x28   : > { %544 = vst.msk [vmem:[#allocation2 + $0x70] sm:$0xff] %vm501_vm0, %v527_v6 }
  0x29   : > { %545 = vst.msk [vmem:[#allocation2 + $0x88] sm:$0xff] %vm501_vm0, %v528_v7 }
  0x2a   : > { %546 = vst.msk [vmem:[#allocation2 + $0x90] sm:$0xff] %vm501_vm0, %v529_v8 }
  0x2b   : > { %547 = vst.msk [vmem:[#allocation2 + $0xa8] sm:$0xff] %vm501_vm0, %v530_v9 }
  0x2c   : > { %548 = vst.msk [vmem:[#allocation2 + $0xb0] sm:$0xff] %vm501_vm0, %v531_v10 }
  0x2d   : > { %549 = vst.msk [vmem:[#allocation2 + $0xc8] sm:$0xff] %vm501_vm0, %v532_v11 }
  0x2e   : > { %550 = vst.msk [vmem:[#allocation2 + $0xd0] sm:$0xff] %vm501_vm0, %v533_v12  ;;  %558 = sbr.rel (%p2496_p10) target bundleno = 54 (0x36), region = 60 }
  0x2f   : > { %551 = vst.msk [vmem:[#allocation2 + $0xe8] sm:$0xff] %vm501_vm0, %v534_v13 }
  0x30   : > { %552 = vst.msk [vmem:[#allocation2 + $0xf0] sm:$0xff] %vm501_vm0, %v535_v14 }
  0x31   : > { %553 = vst.msk [vmem:[#allocation2 + $0x108] sm:$0xff] %vm501_vm0, %v536_v15 }
  0x32   : > { %554 = vst.msk [vmem:[#allocation2 + $0x110] sm:$0xff] %vm501_vm0, %v537_v16 }
  0x33   : > { %v2634_v17 = vmov 0.0  }
  0x34   : > { %559 = vst.msk [vmem:[#allocation2 + $0x8] sm:$0xff] %vm501_vm0, %v2634_v17 }
  0x35   : > { %560 = vst.msk [vmem:[#allocation2 + $0x10] sm:$0xff] %vm501_vm0, %v2634_v17 }
  0x36 PF: > { %p2497_p11 = scmp.le.s32.totalorder %s2615_s30, 0 }
  0x38   : > { %564 = sbr.rel (%p2497_p11) target bundleno = 64 (0x40), region = 64 }
  0x3d   : > { %v565_v18 = vld [vmem:[%s2766_s23] sm:$0xff]  ;;  %v566_v19 = vld [vmem:[%s2766_s23 + $0x8] sm:$0xff] }
  0x3e   : > { %567 = vst.msk [vmem:[#allocation2 + $0x8] sm:$0xff] %vm501_vm0, %v565_v18 }
  0x3f   : > { %568 = vst.msk [vmem:[#allocation2 + $0x10] sm:$0xff] %vm501_vm0, %v566_v19 }
  0x40 PF: > { %p2498_p12 = scmp.ne.s32.totalorder %s2615_s30, 1 }
  0x42   : > { %572 = sbr.rel (%p2498_p12) target bundleno = 74 (0x4a), region = 68 }
  0x47   : > { %v2635_v20 = vmov 0.0  }
  0x48   : > { %574 = vst.msk [vmem:[#allocation2 + $0x128] sm:$0xff] %vm501_vm0, %v2635_v20 }
  0x49   : > { %575 = vst.msk [vmem:[#allocation2 + $0x130] sm:$0xff] %vm501_vm0, %v2635_v20 }
  0x4a PF: > { %p2499_p13 = scmp.ge.s32.totalorder %s2615_s30, 1 }
  0x4c   : > { %579 = sbr.rel (%p2499_p13) target bundleno = 84 (0x54), region = 72 }
  0x51   : > { %v580_v21 = vld [vmem:[%s2772_s10] sm:$0xff]  ;;  %v581_v22 = vld [vmem:[%s2772_s10 + $0x8] sm:$0xff] }
  0x52   : > { %583 = vst.msk [vmem:[#allocation2 + $0x128] sm:$0xff] %vm501_vm0, %v580_v21 }
  0x53   : > { %584 = vst.msk [vmem:[#allocation2 + $0x130] sm:$0xff] %vm501_vm0, %v581_v22 }
  0x54 PF: > { %v2636_v23 = vmov 0   ;;  %v605_v24 = vld [vmem:[#allocation2 + $0x30] sm:$0xff]  ;;  %v606_v25 = vld [vmem:[#allocation2 + $0x38] sm:$0xff]  ;;  %v2830_v27 = vld [vmem:[%s4419_s3] ss:$0 sm:$0xff]  ;;  %vm849_vm1 = vcmask 1045504  }
  0x55   : > { %2559 = vset.pattern.permute.xlu2 %v2636_v23  ;;  %2558 = vset.pattern.permute.xlu1 %v2636_v23  ;;  %v2825_v26 = vld [vmem:[#allocation2 + $0x50] sm:$0xff]  ;;  %v2832_v28 = vld [vmem:[#allocation2 + $0x58] sm:$0xff]  ;;  %v2837_v29 = vld [vmem:[%s4419_s3 + $0x1] ss:$0 sm:$0xff]  ;;  %v647_v31 = vmul.f32 %v2830_v27, %v605_v24  ;;  %vm725_vm2 = vcmask 1046528   ;;  %vm2292_vm3 = vcmask 64519  }
  0x56   : > { %2557 = vset.pattern.permute.xlu0 %v2636_v23  ;;  %v2842_v30 = vld [vmem:[%s4419_s3 + $0x2] ss:$0 sm:$0xff]  ;;  %v2848_v32 = vld [vmem:[%s4419_s3 + $0x3] ss:$0 sm:$0xff]  ;;  %v2853_v33 = vld [vmem:[%s4419_s3 + $0x4] ss:$0 sm:$0xff]  ;;  %v2861_v36 = vmul.f32 %v2837_v29, %v605_v24  ;;  %v2907_v53 = vmul.f32 %v2830_v27, %v2825_v26 }
  0x57   : > { %v2858_v34 = vld [vmem:[%s4419_s3 + $0x5] ss:$0 sm:$0xff]  ;;  %v614_v35 = vld [vmem:[#allocation2 + $0x78] sm:$0xff]  ;;  %v2864_v37 = vmul.f32 %v2842_v30, %v605_v24  ;;  %v806_v38 = vmul.f32 %v2842_v30, %v606_v25  ;;  %v2869_v39 = vmul.f32 %v2842_v30, %v2832_v28  ;;  %v2876_v41 = vmul.f32 %v2853_v33, %v2825_v26  ;;  %v2885_v43 = vld [vmem:[%s4419_s3 + $0x8] ss:$0 sm:$0xff] }
  0x58   : > { %v2872_v40 = vmul.f32 %v2842_v30, %v614_v35  ;;  %v2880_v42 = vmul.f32 %v2858_v34, %v2825_v26  ;;  %v2887_v44 = vld [vmem:[#allocation2 + $0x70] sm:$0xff]  ;;  %v4439_v45 = vrot.slane %v2861_v36, 1  ;;  %v946_v48 = vmul.f32 %v2848_v32, %v2825_v26  ;;  %v2898_v50 = vld [vmem:[%s4419_s3 + $0x6] ss:$0 sm:$0xff]  ;;  %v2903_v51 = vld [vmem:[%s4419_s3 + $0x7] ss:$0 sm:$0xff] }
  0x59   : > { %v4438_v46 = vrot.slane %v2864_v37, 2  ;;  %v858_v47 = vrot.slane %v806_v38, 2  ;;  %v1104_v49 = vmul.f32 %v2858_v34, %v2832_v28  ;;  %v601_v52 = vld [vmem:[#allocation2 + $0x10] sm:$0xff]  ;;  %v863_v56 = vrot.slane %v2869_v39, 2  ;;  %v602_v62 = vld [vmem:[#allocation2 + $0x18] sm:$0xff]  ;;  %v599_v23 = vld [vmem:[#allocation2] sm:$0xff] }
  0x5a   : > { %v779_v54 = vadd.f32 %v4439_v45, %v647_v31  ;;  %v4435_v57 = vrot.slane %v2880_v42, 2  ;;  %v4436_v59 = vrot.slane %v2876_v41, 1  ;;  %v2920_v61 = vmul.f32 %v2885_v43, %v2887_v44 }
  0x5b   : > { %v859_v55 = vsel %vm849_vm1, %v4438_v46, %v858_v47  ;;  %v1155_v60 = vrot.slane %v1104_v49, 2  ;;  %v1401_v0 = vmul.f32 %v2885_v43, %v614_v35  ;;  %v644_v1 = vmul.f32 %v2830_v27, %v601_v52 }
  0x5c   : > { %4483 = vst [vmem:[#allocation3_spill] sm:$0xff] %v2920_v61  ;;  %v919_v63 = vadd.f32 %v859_v55, %v779_v54  ;;  %v2925_v2 = vmul.f32 %v2837_v29, %v601_v52  ;;  %v2928_v3 = vmul.f32 %v2858_v34, %v614_v35  ;;  %v1243_v4 = vmul.f32 %v2898_v50, %v2887_v44  ;;  %v2976_v54 = vld [vmem:[#allocation2 + $0x48] sm:$0xff] }
  0x5d   : > { %v2934_v5 = vmul.f32 %v2903_v51, %v2887_v44  ;;  %v2937_v6 = vmul.f32 %v2842_v30, %v601_v52  ;;  %v1156_v8 = vsel %vm849_vm1, %v4435_v57, %v1155_v60  ;;  %v803_v10 = vmul.f32 %v2842_v30, %v602_v62  ;;  %v2974_v52 = vld [vmem:[#allocation2 + $0x8] sm:$0xff] }
  0x5e   : > { %4484 = vst [vmem:[#allocation4_spill] sm:$0xff] %v2925_v2  ;;  %v970_v7 = vadd.f32 %v946_v48, %v919_v63  ;;  %v4429_v9 = vrot.slane %v2925_v2, 1  ;;  %v4430_v11 = vrot.slane %v2920_v61, 2  ;;  %v2947_v13 = vmul.f32 %v2853_v33, %v605_v24 }
  0x5f   : > { %4485 = vst [vmem:[#allocation5_spill] sm:$0xff] %v2934_v5  ;;  %v4428_v12 = vrot.slane %v2937_v6, 2  ;;  %v2950_v14 = vmul.f32 %v2858_v34, %v605_v24  ;;  %v1452_v16 = vrot.slane %v1401_v0, 2  ;;  %v853_v18 = vrot.slane %v803_v10, 2 }
  0x60   : > { %4486 = vst [vmem:[#allocation6_spill] sm:$0xff] %v2937_v6  ;;  %v1077_v15 = vadd.f32 %v4436_v59, %v970_v7  ;;  %v776_v17 = vadd.f32 %v4429_v9, %v644_v1  ;;  %v4432_v19 = vrot.slane %v2934_v5, 1  ;;  %v943_v20 = vmul.f32 %v2848_v32, %v605_v24 }
  0x61   : > { %4487 = vst [vmem:[#allocation7_spill] sm:$0xff] %v2947_v13  ;;  %v1101_v21 = vmul.f32 %v2858_v34, %v606_v25  ;;  %v4426_v22 = vrot.slane %v2950_v14, 2  ;;  %v854_v35 = vsel %vm849_vm1, %v4428_v12, %v853_v18  ;;  %v4427_v38 = vrot.slane %v2947_v13, 1  ;;  %v615_v13 = vld [vmem:[#allocation2 + $0x80] sm:$0xff] }
  0x62   : > { %4488 = vst [vmem:[#allocation8_spill] sm:$0xff] %v2950_v14  ;;  %v1216_v31 = vadd.f32 %v1156_v8, %v1077_v15  ;;  %v2966_v47 = vmul.f32 %v2885_v43, %v2825_v26  ;;  %v916_v48 = vadd.f32 %v854_v35, %v776_v17  ;;  %v2970_v24 = vmul.f32 %v2903_v51, %v2825_v26  ;;  %v607_v8 = vld [vmem:[#allocation2 + $0x40] sm:$0xff] }
  0x63   : > { %v1150_v49 = vrot.slane %v1101_v21, 2  ;;  %v1398_v25 = vmul.f32 %v2885_v43, %v2832_v28  ;;  %4491 = vst [vmem:[#allocation11_spill] sm:$0xff] %v2974_v52  ;;  %v1453_v62 = vsel %vm849_vm1, %v4430_v11, %v1452_v16  ;;  %v642_v63 = vmul.f32 %v2830_v27, %v599_v23  ;;  %v603_v15 = vld [vmem:[#allocation2 + $0x20] sm:$0xff]  ;;  %v2994_v16 = vld [vmem:[#allocation2 + $0x28] sm:$0xff] }
  0x64   : > { %4489 = vst [vmem:[#allocation9_spill] sm:$0xff] %v2966_v47  ;;  %v1267_v60 = vadd.f32 %v1243_v4, %v1216_v31  ;;  %v967_v0 = vadd.f32 %v943_v20, %v916_v48  ;;  %v4431_v28 = vrot.slane %v2966_v47, 2  ;;  %v2992_v4 = vld [vmem:[%s4420_s4] ss:$0 sm:$0xff]  ;;  %v2998_v17 = vmul.f32 %v2837_v29, %v2974_v52 }
  0x65   : > { %4490 = vst [vmem:[#allocation10_spill] sm:$0xff] %v2970_v24  ;;  %v1151_v1 = vsel %vm849_vm1, %v4426_v22, %v1150_v49  ;;  %v1447_v7 = vrot.slane %v1398_v25, 2  ;;  %v3002_v18 = vmul.f32 %v2837_v29, %v2976_v54  ;;  %v3006_v20 = vmul.f32 %v2842_v30, %v2974_v52  ;;  %v3019_v49 = vld [vmem:[%s4421_s5] ss:$0 sm:$0xff] }
  0x66   : > { %v1374_v10 = vadd.f32 %v4432_v19, %v1267_v60  ;;  %4492 = vst [vmem:[#allocation12_spill] sm:$0xff] %v2998_v17  ;;  %v1074_v21 = vadd.f32 %v4427_v38, %v967_v0  ;;  %v1240_v23 = vmul.f32 %v2898_v50, %v2825_v26  ;;  %v4437_v31 = vrot.slane %v2970_v24, 1  ;;  %v611_v47 = vld [vmem:[#allocation2 + $0x60] sm:$0xff] }
  0x67   : > { %4493 = vst [vmem:[#allocation13_spill] sm:$0xff] %v3006_v20  ;;  %v3014_v35 = vmul.f32 %v2830_v27, %v603_v15  ;;  %v648_v25 = vmul.f32 %v2830_v27, %v607_v8  ;;  %v4433_v60 = vrot.slane %v2998_v17, 1  ;;  %v4434_v0 = vrot.slane %v3006_v20, 2 }
  0x68   : > { %v1513_v48 = vadd.f32 %v1453_v62, %v1374_v10  ;;  %v1213_v22 = vadd.f32 %v1151_v1, %v1074_v21  ;;  %v1448_v38 = vsel %vm849_vm1, %v4431_v28, %v1447_v7  ;;  %v4440_v12 = vrot.slane %v3002_v18, 1 }
  0x69   : > { %v3030_v62 = vmul.f32 %v2853_v33, %v2994_v16  ;;  %v774_v9 = vadd.f32 %v4433_v60, %v642_v63  ;;  %v941_v11 = vmul.f32 %v2848_v32, %v603_v15  ;;  %v3038_v1 = vmul.f32 %v2858_v34, %v2994_v16 }
  0x6a   : > { %v1540_v10 = vmul.f32 %v2992_v4, %v1513_v48  ;;  %v1264_v21 = vadd.f32 %v1240_v23, %v1213_v22  ;;  %v3041_v7 = vmul.f32 %v2848_v32, %v607_v8  ;;  %v1238_v28 = vmul.f32 %v2898_v50, %v607_v8 }
  0x6b   : > { %4494 = vst [vmem:[#allocation14_spill] sm:$0xff] %v3030_v62  ;;  %v3046_v19 = vmul.f32 %v2903_v51, %v2976_v54  ;;  %v914_v63 = vadd.f32 %v4434_v0, %v774_v9  ;;  %v4441_v15 = vrot.slane %v3030_v62, 1  ;;  %v3054_v60 = vmul.f32 %v2837_v29, %v2825_v26 }
  0x6c   : > { %4495 = vst [vmem:[#allocation15_spill] sm:$0xff] %v3038_v1  ;;  %v1567_v48 = vadd.f32 %v3019_v49, %v1540_v10  ;;  %v1371_v22 = vadd.f32 %v4437_v31, %v1264_v21  ;;  %v3060_v8 = vadd.f32 %v4440_v12, %v648_v25  ;;  %v3064_v23 = vmul.f32 %v2885_v43, %v2976_v54 }
  0x6d   : > { %4496 = vst [vmem:[#allocation16_spill] sm:$0xff] %v3046_v19  ;;  %v3068_v9 = vmul.f32 %v2842_v30, %v2825_v26  ;;  %v965_v0 = vadd.f32 %v941_v11, %v914_v63  ;;  %v4444_v57 = vrot.slane %v3038_v1, 2  ;;  %v4442_v59 = vrot.slane %v3054_v60, 1  ;;  %v618_v11 = vld [vmem:[#allocation2 + $0x98] sm:$0xff] }
  0x6e   : > { %4497 = vst [vmem:[#allocation17_spill] sm:$0xff] %v3064_v23  ;;  %v3070_v10 = vmax.f32 %v1567_v48, 0.0  ;;  %v1510_v21 = vadd.f32 %v1448_v38, %v1371_v22  ;;  %v3078_v46 = vmul.f32 %v2853_v33, %v2887_v44  ;;  %v3083_v48 = vld [vmem:[#allocation2 + $0x90] sm:$0xff]  ;;  %v949_v63 = vmul.f32 %v2848_v32, %v2887_v44 }
  0x6f   : > { %v4443_v25 = vrot.slane %v3068_v9, 2  ;;  %v1072_v26 = vadd.f32 %v4441_v15, %v965_v0  ;;  %4499 = vst [vmem:[#allocation19_spill] sm:$0xff] %v3083_v48  ;;  %v782_v38 = vadd.f32 %v4442_v59, %v2907_v53  ;;  %v3092_v22 = vmul.f32 %v2858_v34, %v2887_v44 }
  0x70   : > { %4498 = vst [vmem:[#allocation18_spill] sm:$0xff] %v3070_v10  ;;  %1637 = vperm.xlu2 %2559, %v3070_v10   ;;  %v1537_v45 = vmul.f32 %v2992_v4, %v1510_v21  ;;  %v3097_v0 = vmul.f32 %v2842_v30, %v618_v11  ;;  %v3110_v12 = vmul.f32 %v2858_v34, %v618_v11  ;;  %vm2296_vm4 = vcmask 63488  }
  0x71   : > { %v864_v53 = vsel %vm849_vm1, %v4443_v25, %v863_v56  ;;  %v1211_v15 = vadd.f32 %v4444_v57, %v1072_v26  ;;  %v4447_v31 = vrot.slane %v3092_v22, 2  ;;  %v3114_v39 = vmul.f32 %v2885_v43, %v3083_v48 }
  0x72   : > { %4500 = vst [vmem:[#allocation20_spill] sm:$0xff] %v3097_v0  ;;  %v922_v59 = vadd.f32 %v864_v53, %v782_v38  ;;  %v1564_v21 = vadd.f32 %v3019_v49, %v1537_v45  ;;  %v1404_v55 = vmul.f32 %v2885_v43, %v618_v11  ;;  %v1246_v26 = vmul.f32 %v2898_v50, %v3083_v48 }
  0x73   : > { %v1262_v56 = vadd.f32 %v1238_v28, %v1211_v15  ;;  %v3121_v38 = vmul.f32 %v2903_v51, %v3083_v48  ;;  %v4502_v45 = vrot.slane %v2928_v3, 2  ;;  %v3131_v28 = vld [vmem:[#allocation2 + $0x68] sm:$0xff]  ;;  %v1241_v62 = vmul.f32 %v2898_v50, %v611_v47 }
  0x74   : > { %v973_v25 = vadd.f32 %v949_v63, %v922_v59  ;;  %v3123_v53 = vmax.f32 %v1564_v21, 0.0  ;;  %v1457_v11 = vrot.slane %v1404_v55, 2  ;;  %v4503_v59 = vrot.slane %v3046_v19, 1 }
  0x75   : > { %v1161_v57 = vsel %vm849_vm1, %v4447_v31, %v4502_v45  ;;  %v4504_v63 = vrot.slane %v3078_v46, 1  ;;  %v3139_v21 = vmul.f32 %v2837_v29, %v2994_v16  ;;  %v3143_v3 = vmul.f32 %v2837_v29, %v3131_v28 }
  0x76   : > { %4501 = vst [vmem:[#allocation21_spill] sm:$0xff] %v3123_v53  ;;  %v1369_v15 = vadd.f32 %v4503_v59, %v1262_v56  ;;  %1622 = vperm.xlu1 %2558, %v3123_v53   ;;  %v3150_v56 = vmul.f32 %v2842_v30, %v2994_v16  ;;  %v4505_v59 = vrot.slane %v3064_v23, 2  ;;  %v4460_v58 = vrot.slane %v3121_v38, 1 }
  0x77   : > { %v1080_v10 = vadd.f32 %v4504_v63, %v973_v25  ;;  %v3154_v25 = vmul.f32 %v2853_v33, %v2976_v54  ;;  %v4455_v53 = vrot.slane %v3139_v21, 1  ;;  %v651_v55 = vmul.f32 %v2830_v27, %v611_v47 }
  0x78   : > { %v1508_v63 = vadd.f32 %v4505_v59, %v1369_v15  ;;  %v3165_v19 = vmul.f32 %v2858_v34, %v2976_v54  ;;  %v947_v59 = vmul.f32 %v2848_v32, %v611_v47  ;;  %v3178_v0 = vmul.f32 %v2903_v51, %v3131_v28 }
  0x79   : > { %v1219_v31 = vadd.f32 %v1161_v57, %v1080_v10  ;;  %v4506_v57 = vrot.slane %v3114_v39, 2  ;;  %v777_v15 = vadd.f32 %v4455_v53, %v3014_v35  ;;  %v4509_v35 = vrot.slane %v3150_v56, 2 }
  0x7a   : > { %v1535_v24 = vmul.f32 %v2992_v4, %v1508_v63  ;;  %4507 = vst [vmem:[#allocation22_spill] sm:$0xff] %v3178_v0  ;;  %v3182_v63 = vmul.f32 %v2885_v43, %v3131_v28  ;;  %v4511_v45 = vrot.slane %v3143_v3, 1  ;;  %v3217_v47 = vmul.f32 %v2858_v34, %v3131_v28 }
  0x7b   : > { %v1270_v23 = vadd.f32 %v1246_v26, %v1219_v31  ;;  %v1458_v10 = vsel %vm849_vm1, %v4506_v57, %v1457_v11  ;;  %v3184_v31 = vld [vmem:[#allocation2 + $0x88] sm:$0xff]  ;;  %v917_v57 = vadd.f32 %v4509_v35, %v777_v15  ;;  %v3229_v14 = vmul.f32 %v2848_v32, %v615_v13 }
  0x7c   : > { %4508 = vst [vmem:[#allocation23_spill] sm:$0xff] %v3182_v63  ;;  %v1562_v26 = vadd.f32 %v3019_v49, %v1535_v24  ;;  %v3193_v53 = vmul.f32 %v2837_v29, %v3184_v31  ;;  %v3197_v1 = vadd.f32 %v4511_v45, %v651_v55  ;;  %v3203_v24 = vmul.f32 %v2842_v30, %v2976_v54 }
  0x7d   : > { %v1377_v11 = vadd.f32 %v4460_v58, %v1270_v23  ;;  %v968_v35 = vadd.f32 %v3041_v7, %v917_v57  ;;  %v654_v58 = vmul.f32 %v2830_v27, %v615_v13  ;;  %v3213_v45 = vmul.f32 %v2853_v33, %v3131_v28 }
  0x7e   : > { %4510 = vst [vmem:[#allocation24_spill] sm:$0xff] %v3193_v53  ;;  %v3205_v23 = vmax.f32 %v1562_v26, 0.0  ;;  %v4465_v55 = vrot.slane %v3203_v24, 2  ;;  %v4513_v7 = vrot.slane %v3154_v25, 1  ;;  %v3242_v57 = vmul.f32 %v2885_v43, %v3184_v31 }
  0x7f   : > { %v1516_v15 = vadd.f32 %v1458_v10, %v1377_v11  ;;  %v1157_v11 = vrot.slane %v3217_v47, 2  ;;  %v3248_v6 = vmul.f32 %v2837_v29, %v2887_v44  ;;  %v4516_v47 = vrot.slane %v3193_v53, 1 }
  0x80   : > { %4512 = vst [vmem:[#allocation25_spill] sm:$0xff] %v3205_v23  ;;  %1612 = vperm.xlu0 %2557, %v3205_v23   ;;  %v1075_v26 = vadd.f32 %v4513_v7, %v968_v35  ;;  %v920_v20 = vadd.f32 %v4465_v55, %v3060_v8  ;;  %v3234_v23 = vmul.f32 %v2903_v51, %v3184_v31  ;;  %v4514_v35 = vrot.slane %v3165_v19, 2 }
  0x81   : > { %v1543_v10 = vmul.f32 %v2992_v4, %v1516_v15  ;;  %v653_v55 = vmul.f32 %v2830_v27, %v2887_v44  ;;  %v4473_v52 = vrot.slane %v3248_v6, 1  ;;  %vm2294_vm5 = vcmask 64512  }
  0x82   : > { %v1214_v7 = vadd.f32 %v4514_v35, %v1075_v26  ;;  %v971_v8 = vadd.f32 %v947_v59, %v920_v20  ;;  %v3258_v35 = vadd.f32 %v4516_v47, %v654_v58  ;;  %v1244_v20 = vmul.f32 %v2898_v50, %v615_v13 }
  0x83   : > { %v1570_v15 = vadd.f32 %v3019_v49, %v1543_v10  ;;  %v3252_v10 = vmul.f32 %v2842_v30, %v2887_v44  ;;  %v4518_v59 = vrot.slane %v3213_v45, 1  ;;  %v3267_v44 = vmul.f32 %v2853_v33, %v3083_v48 }
  0x84   : > { %v1265_v26 = vadd.f32 %v1241_v62, %v1214_v7  ;;  %4517 = vst [vmem:[#allocation27_spill] sm:$0xff] %v3258_v35  ;;  %v4519_v62 = vrot.slane %v3178_v0, 1  ;;  %v1327_v58 = vrot.slane %v3234_v23, 1  ;;  %v1454_v13 = vrot.slane %v3242_v57, 2  ;;  %v3274_v7 = vld [vmem:[#allocation2 + $0xb0] sm:$0xff] }
  0x85   : > { %v3254_v17 = vmax.f32 %v1570_v15, 0.0  ;;  %v1078_v2 = vadd.f32 %v4518_v59, %v971_v8  ;;  %4520 = vst [vmem:[#allocation28_spill] sm:$0xff] %v3274_v7  ;;  %v3278_v8 = vmul.f32 %v2858_v34, %v3083_v48  ;;  %v622_v59 = vld [vmem:[#allocation2 + $0xb8] sm:$0xff]  ;;  %v785_v61 = vadd.f32 %v4473_v52, %v653_v55 }
  0x86   : > { %v1372_v15 = vadd.f32 %v4519_v62, %v1265_v26  ;;  %v4523_v35 = vrot.slane %v3252_v10, 2  ;;  %v952_v23 = vmul.f32 %v2848_v32, %v3083_v48  ;;  %v4524_v57 = vrot.slane %v3182_v63, 2 }
  0x87   : > { %4515 = vst [vmem:[#allocation26_spill] sm:$0xff] %v3254_v17  ;;  %1652 = vperm.xlu2 %2559, %v3254_v17   ;;  %v1217_v47 = vadd.f32 %v1157_v11, %v1078_v2  ;;  %v4522_v17 = vrot.slane %v2872_v40, 2  ;;  %v3292_v53 = vmul.f32 %v2842_v30, %v622_v59  ;;  %v3295_v2 = vmul.f32 %v2858_v34, %v622_v59 }
  0x88   : > { %4521 = vst [vmem:[#allocation29_spill] sm:$0xff] %v3278_v8  ;;  %v1511_v62 = vadd.f32 %v4524_v57, %v1372_v15  ;;  %v1249_v15 = vmul.f32 %v2898_v50, %v3274_v7  ;;  %v1407_v57 = vmul.f32 %v2885_v43, %v622_v59  ;;  %v649_v48 = vmul.f32 %v2830_v27, %v2976_v54 }
  0x89   : > { %v869_v26 = vsel %vm849_vm1, %v4523_v35, %v4522_v17  ;;  %v1268_v52 = vadd.f32 %v1244_v20, %v1217_v47  ;;  %v3301_v17 = vmul.f32 %v2885_v43, %v3274_v7  ;;  %v4526_v20 = vrot.slane %v3278_v8, 2 }
  0x8a   : > { %v925_v40 = vadd.f32 %v869_v26, %v785_v61  ;;  %v1538_v35 = vmul.f32 %v2992_v4, %v1511_v62  ;;  %v4525_v61 = vrot.slane %v3110_v12, 2  ;;  %v3316_v26 = vmul.f32 %v2903_v51, %v3274_v7 }
  0x8b   : > { %v1375_v63 = vadd.f32 %v1327_v58, %v1268_v52  ;;  %v1460_v0 = vrot.slane %v3301_v17, 2  ;;  %v1462_v59 = vrot.slane %v1407_v57, 2  ;;  %v4527_v52 = vrot.slane %v3267_v44, 1 }
  0x8c   : > { %v976_v55 = vadd.f32 %v952_v23, %v925_v40  ;;  %v1166_v47 = vsel %vm849_vm1, %v4526_v20, %v4525_v61  ;;  %v1565_v62 = vadd.f32 %v3019_v49, %v1538_v35  ;;  %v4528_v12 = vrot.slane %v3054_v60, 1 }
  0x8d   : > { %v1514_v5 = vadd.f32 %v1454_v13, %v1375_v63  ;;  %v4529_v40 = vrot.slane %v3002_v18, 1  ;;  %v4530_v20 = vrot.slane %v3068_v9, 2  ;;  %v4531_v7 = vrot.slane %v3203_v24, 2 }
  0x8e   : > { %v1083_v23 = vadd.f32 %v4527_v52, %v976_v55  ;;  %v3332_v8 = vmax.f32 %v1565_v62, 0.0  ;;  %v948_v55 = vmul.f32 %v2848_v32, %v3131_v28  ;;  %v1463_v9 = vsel %vm849_vm1, %v1460_v0, %v1462_v59 }
  0x8f   : > { %v734_v61 = vsel %vm725_vm2, %v4529_v40, %v4528_v12  ;;  %v862_v35 = vsel %vm849_vm1, %v4531_v7, %v4530_v20  ;;  %v1541_v60 = vmul.f32 %v2992_v4, %v1514_v5  ;;  %v1331_v12 = vrot.slane %v3316_v26, 1  ;;  %v4572_v26 = vld [vmem:[#allocation19_spill] sm:$0xff] }
  0x90   : > { %v781_v63 = vadd.f32 %v734_v61, %v649_v48  ;;  %v1222_v52 = vadd.f32 %v1166_v47, %v1083_v23  ;;  %1627 = vperm.xlu1 %2558, %v3332_v8   ;;  %v4532_v7 = vrot.slane %v3078_v46, 1  ;;  %v4533_v48 = vrot.slane %v3213_v45, 1  ;;  %v3352_v47 = vld [vmem:[#allocation2 + $0xa8] sm:$0xff] }
  0x91   : > { %v4534_v5 = vrot.slane %v3092_v22, 2  ;;  %v1568_v23 = vadd.f32 %v3019_v49, %v1541_v60  ;;  %v3357_v20 = vmul.f32 %v2837_v29, %v3352_v47  ;;  %v810_v46 = vmul.f32 %v2842_v30, %v3131_v28  ;;  %v619_v60 = vld [vmem:[#allocation2 + $0xa0] sm:$0xff] }
  0x92   : > { %v921_v24 = vadd.f32 %v862_v35, %v781_v63  ;;  %v1032_v62 = vsel %vm725_vm2, %v4533_v48, %v4532_v7  ;;  %v1273_v61 = vadd.f32 %v1249_v15, %v1222_v52  ;;  %v1245_v45 = vmul.f32 %v2898_v50, %v3184_v31 }
  0x93   : > { %v1159_v40 = vsel %vm849_vm1, %v1157_v11, %v4534_v5  ;;  %v4535_v22 = vrot.slane %v3121_v38, 1  ;;  %v998_v35 = vmul.f32 %v2853_v33, %v3184_v31  ;;  %v3368_v63 = vmax.f32 %v1568_v23, 0.0 }
  0x94   : > { %v972_v59 = vadd.f32 %v948_v55, %v921_v24  ;;  %v1380_v15 = vadd.f32 %v1331_v12, %v1273_v61  ;;  %v865_v52 = vrot.slane %v810_v46, 2  ;;  %v1108_v55 = vmul.f32 %v2858_v34, %v3184_v31 }
  0x95   : > { %v1329_v11 = vsel %vm725_vm2, %v1327_v58, %v4535_v22  ;;  %v4536_v7 = vrot.slane %v3114_v39, 2  ;;  %v657_v58 = vmul.f32 %v2830_v27, %v619_v60  ;;  %v741_v48 = vrot.slane %v3357_v20, 1  ;;  %1642 = vperm.xlu0 %2557, %v3368_v63  }
  0x96   : > { %v1079_v24 = vadd.f32 %v1032_v62, %v972_v59  ;;  %v1519_v5 = vadd.f32 %v1463_v9, %v1380_v15  ;;  %v923_v23 = vadd.f32 %v865_v52, %v3197_v1  ;;  %v1033_v61 = vrot.slane %v998_v35, 1 }
  0x97   : > { %v1456_v38 = vsel %vm849_vm1, %v1454_v13, %v4536_v7  ;;  %v1295_v46 = vmul.f32 %v2903_v51, %v3352_v47  ;;  %v1405_v62 = vmul.f32 %v2885_v43, %v3352_v47  ;;  %v646_v39 = vmul.f32 %v2830_v27, %v2994_v16 }
  0x98   : > { %v1218_v22 = vadd.f32 %v1159_v40, %v1079_v24  ;;  %v4537_v13 = vrot.slane %v2861_v36, 1  ;;  %v4538_v59 = vrot.slane %v3139_v21, 1  ;;  %v1546_v9 = vmul.f32 %v2992_v4, %v1519_v5 }
  0x99   : > { %v974_v1 = vadd.f32 %v3229_v14, %v923_v23  ;;  %v1162_v35 = vrot.slane %v1108_v55, 2  ;;  %v4539_v15 = vrot.slane %v2864_v37, 2  ;;  %v4540_v40 = vrot.slane %v3150_v56, 2 }
  0x9a   : > { %v731_v7 = vsel %vm725_vm2, %v4538_v59, %v4537_v13  ;;  %v1269_v57 = vadd.f32 %v1245_v45, %v1218_v22  ;;  %v3400_v18 = vmul.f32 %v2848_v32, %v619_v60  ;;  %v945_v21 = vmul.f32 %v2848_v32, %v2976_v54 }
  0x9b   : > { %v857_v24 = vsel %vm849_vm1, %v4540_v40, %v4539_v15  ;;  %v778_v36 = vadd.f32 %v731_v7, %v646_v39  ;;  %v1573_v13 = vadd.f32 %v3019_v49, %v1546_v9  ;;  %v3407_v14 = vadd.f32 %v741_v48, %v657_v58 }
  0x9c   : > { %v1081_v55 = vadd.f32 %v1033_v61, %v974_v1  ;;  %v1247_v37 = vmul.f32 %v2898_v50, %v619_v60  ;;  %v1376_v56 = vadd.f32 %v1329_v11, %v1269_v57  ;;  %v1330_v5 = vrot.slane %v1295_v46, 1 }
  0x9d   : > { %v1459_v23 = vrot.slane %v1405_v62, 2  ;;  %v918_v45 = vadd.f32 %v857_v24, %v778_v36  ;;  %v3410_v22 = vmax.f32 %v1573_v13, 0.0  ;;  %v4541_v39 = vrot.slane %v2876_v41, 1  ;;  %v4550_v13 = vld [vmem:[#allocation22_spill] sm:$0xff] }
  0x9e   : > { %v1220_v59 = vadd.f32 %v1162_v35, %v1081_v55  ;;  %v4542_v7 = vrot.slane %v3154_v25, 1  ;;  %v652_v58 = vmul.f32 %v2830_v27, %v3131_v28  ;;  %v1515_v15 = vadd.f32 %v1456_v38, %v1376_v56 }
  0x9f   : > { %v969_v1 = vadd.f32 %v945_v21, %v918_v45  ;;  %v4543_v60 = vrot.slane %v3248_v6, 1  ;;  %v4544_v57 = vrot.slane %v3143_v3, 1  ;;  %v4545_v46 = vrot.slane %v3252_v10, 2  ;;  %1667 = vperm.xlu2 %2559, %v3410_v22   ;;  %v4554_v45 = vld [vmem:[#allocation23_spill] sm:$0xff] }
  0xa0   : > { %v1029_v9 = vsel %vm725_vm2, %v4542_v7, %v4541_v39  ;;  %v1271_v41 = vadd.f32 %v1247_v37, %v1220_v59  ;;  %v4546_v25 = vrot.slane %v2880_v42, 2  ;;  %v4547_v40 = vrot.slane %v3165_v19, 2  ;;  %v4552_v19 = vld [vmem:[#allocation3_spill] sm:$0xff] }
  0xa1   : > { %v737_v11 = vsel %vm725_vm2, %v4544_v57, %v4543_v60  ;;  %v867_v62 = vsel %vm849_vm1, %v865_v52, %v4545_v46  ;;  %v951_v6 = vmul.f32 %v2848_v32, %v3184_v31  ;;  %v1542_v3 = vmul.f32 %v2992_v4, %v1515_v15  ;;  %v4548_v52 = vld [vmem:[#allocation5_spill] sm:$0xff]  ;;  %v4558_v57 = vld [vmem:[#allocation4_spill] sm:$0xff] }
  0xa2   : > { %v1154_v38 = vsel %vm849_vm1, %v4547_v40, %v4546_v25  ;;  %v784_v24 = vadd.f32 %v737_v11, %v652_v58  ;;  %v1076_v36 = vadd.f32 %v1029_v9, %v969_v1  ;;  %v1242_v10 = vmul.f32 %v2898_v50, %v3131_v28  ;;  %v4557_v1 = vld [vmem:[#allocation11_spill] sm:$0xff]  ;;  %v4560_v46 = vld [vmem:[#allocation12_spill] sm:$0xff] }
  0xa3   : > { %v4549_v21 = vrot.slane %v4548_v52, 1  ;;  %v4551_v55 = vrot.slane %v4550_v13, 1  ;;  %v1378_v37 = vadd.f32 %v1330_v5, %v1271_v41  ;;  %v4553_v56 = vrot.slane %v4552_v19, 2  ;;  %v4566_v13 = vld [vmem:[#allocation13_spill] sm:$0xff] }
  0xa4   : > { %v4555_v59 = vrot.slane %v4554_v45, 2  ;;  %v924_v7 = vadd.f32 %v867_v62, %v784_v24  ;;  %v4556_v58 = vrot.slane %v3267_v44, 1  ;;  %v1569_v28 = vadd.f32 %v3019_v49, %v1542_v3  ;;  %v4564_v24 = vld [vmem:[#allocation6_spill] sm:$0xff] }
  0xa5   : > { %v1326_v42 = vsel %vm725_vm2, %v4551_v55, %v4549_v21  ;;  %v1215_v15 = vadd.f32 %v1154_v38, %v1076_v36  ;;  %v643_v60 = vmul.f32 %v2830_v27, %v4557_v1  ;;  %v4559_v11 = vrot.slane %v4558_v57, 1  ;;  %v4562_v21 = vld [vmem:[#allocation29_spill] sm:$0xff]  ;;  %v4573_v57 = vld [vmem:[#allocation8_spill] sm:$0xff] }
  0xa6   : > { %v1451_v39 = vsel %vm849_vm1, %v4555_v59, %v4553_v56  ;;  %v1035_v9 = vsel %vm725_vm2, %v1033_v61, %v4556_v58  ;;  %v4561_v41 = vrot.slane %v4560_v46, 1  ;;  %v1517_v40 = vadd.f32 %v1459_v23, %v1378_v37  ;;  %v4568_v58 = vld [vmem:[#allocation7_spill] sm:$0xff] }
  0xa7   : > { %v975_v52 = vadd.f32 %v951_v6, %v924_v7  ;;  %v4563_v62 = vrot.slane %v4562_v21, 2  ;;  %v4565_v61 = vrot.slane %v4564_v24, 2  ;;  %v4567_v3 = vrot.slane %v4566_v13, 2  ;;  %v4577_v24 = vld [vmem:[#allocation28_spill] sm:$0xff] }
  0xa8   : > { %v728_v25 = vsel %vm725_vm2, %v4561_v41, %v4559_v11  ;;  %v3467_v36 = vmax.f32 %v1569_v28, 0.0  ;;  %v1266_v55 = vadd.f32 %v1242_v10, %v1215_v15  ;;  %v942_v56 = vmul.f32 %v2848_v32, %v2994_v16  ;;  %v4570_v28 = vld [vmem:[#allocation14_spill] sm:$0xff] }
  0xa9   : > { %v1164_v44 = vsel %vm849_vm1, %v1162_v35, %v4563_v62  ;;  %v852_v38 = vsel %vm849_vm1, %v4567_v3, %v4565_v61  ;;  %v775_v19 = vadd.f32 %v728_v25, %v643_v60  ;;  %v1544_v37 = vmul.f32 %v2992_v4, %v1517_v40 }
  0xaa   : > { %v1082_v6 = vadd.f32 %v1035_v9, %v975_v52  ;;  %v1248_v45 = vmul.f32 %v2898_v50, %v3352_v47  ;;  %v1332_v35 = vsel %vm725_vm2, %v1330_v5, %v1331_v12  ;;  %1647 = vperm.xlu1 %2558, %v3467_v36   ;;  %v1373_v59 = vadd.f32 %v1326_v42, %v1266_v55 }
  0xab   : > { %v1461_v10 = vsel %vm849_vm1, %v1459_v23, %v1460_v0  ;;  %v915_v7 = vadd.f32 %v852_v38, %v775_v19  ;;  %v4569_v16 = vrot.slane %v4568_v58, 1  ;;  %v4571_v15 = vrot.slane %v4570_v28, 1  ;;  %v4575_v23 = vld [vmem:[#allocation15_spill] sm:$0xff] }
  0xac   : > { %v1571_v1 = vadd.f32 %v3019_v49, %v1544_v37  ;;  %v1221_v60 = vadd.f32 %v1164_v44, %v1082_v6  ;;  %v656_v12 = vmul.f32 %v2830_v27, %v4572_v26  ;;  %v702_v5 = vmul.f32 %v2837_v29, %v4572_v26  ;;  %v4580_v6 = vld [vmem:[#allocation16_spill] sm:$0xff] }
  0xad   : > { %v1026_v9 = vsel %vm725_vm2, %v4571_v15, %v4569_v16  ;;  %v1512_v42 = vadd.f32 %v1451_v39, %v1373_v59  ;;  %v966_v17 = vadd.f32 %v942_v56, %v915_v7  ;;  %v4574_v0 = vrot.slane %v4573_v57, 2  ;;  %v4578_v56 = vld [vmem:[#allocation10_spill] sm:$0xff]  ;;  %v3521_v7 = vld [vmem:[#allocation2 + $0xd0] sm:$0xff] }
  0xae   : > { %v4576_v11 = vrot.slane %v4575_v23, 2  ;;  %v3498_v41 = vmul.f32 %v2842_v30, %v4572_v26  ;;  %v3500_v25 = vmax.f32 %v1571_v1, 0.0  ;;  %v1272_v40 = vadd.f32 %v1248_v45, %v1221_v60  ;;  %v626_v15 = vld [vmem:[#allocation2 + $0xd8] sm:$0xff] }
  0xaf   : > { %v1239_v52 = vmul.f32 %v2898_v50, %v2976_v54  ;;  %v739_v21 = vrot.slane %v702_v5, 1  ;;  %v1539_v39 = vmul.f32 %v2992_v4, %v1512_v42  ;;  %v1073_v62 = vadd.f32 %v1026_v9, %v966_v17  ;;  %v4584_v5 = vld [vmem:[#allocation9_spill] sm:$0xff] }
  0xb0   : > { %v1149_v46 = vsel %vm849_vm1, %v4576_v11, %v4574_v0  ;;  %v871_v44 = vrot.slane %v3498_v41, 2  ;;  %v955_v61 = vmul.f32 %v2848_v32, %v4577_v24  ;;  %1657 = vperm.xlu0 %2557, %v3500_v25   ;;  %v1379_v13 = vadd.f32 %v1332_v35, %v1272_v40  ;;  %v4582_v35 = vld [vmem:[#allocation20_spill] sm:$0xff]  ;;  %v4586_v17 = vld [vmem:[#allocation17_spill] sm:$0xff] }
  0xb1   : > { %v788_v3 = vadd.f32 %v739_v21, %v656_v12  ;;  %v1001_v38 = vmul.f32 %v2853_v33, %v4577_v24  ;;  %v3513_v55 = vmul.f32 %v2858_v34, %v4577_v24  ;;  %v1566_v54 = vadd.f32 %v3019_v49, %v1539_v39 }
  0xb2   : > { %v1212_v19 = vadd.f32 %v1149_v46, %v1073_v62  ;;  %v4579_v37 = vrot.slane %v4578_v56, 1  ;;  %v4581_v45 = vrot.slane %v4580_v6, 1  ;;  %v4583_v58 = vrot.slane %v4582_v35, 2 }
  0xb3   : > { %v1518_v28 = vadd.f32 %v1461_v10, %v1379_v13  ;;  %v1037_v1 = vrot.slane %v1001_v38, 1  ;;  %v1168_v60 = vrot.slane %v3513_v55, 2  ;;  %v3527_v26 = vmax.f32 %v1566_v54, 0.0  ;;  %v4589_v38 = vld [vmem:[#allocation24_spill] sm:$0xff] }
  0xb4   : > { %v1323_v59 = vsel %vm725_vm2, %v4581_v45, %v4579_v37  ;;  %v874_v16 = vsel %vm849_vm1, %v871_v44, %v4583_v58  ;;  %v1263_v12 = vadd.f32 %v1239_v52, %v1212_v19  ;;  %v4585_v42 = vrot.slane %v4584_v5, 2  ;;  %v3561_v45 = vld [vmem:[#allocation2 + $0xc8] sm:$0xff] }
  0xb5   : > { %v928_v9 = vadd.f32 %v874_v16, %v788_v3  ;;  %v4587_v57 = vrot.slane %v4586_v17, 2  ;;  %v3535_v23 = vmul.f32 %v2842_v30, %v626_v15  ;;  %v1545_v11 = vmul.f32 %v2992_v4, %v1518_v28  ;;  %1632 = vperm.xlu2 %2559, %v3527_v26  }
  0xb6   : > { %v4588_v46 = vrot.slane %v3295_v2, 2  ;;  %v1298_v40 = vmul.f32 %v2903_v51, %v3521_v7  ;;  %v1370_v52 = vadd.f32 %v1323_v59, %v1263_v12  ;;  %v3546_v39 = vmul.f32 %v2885_v43, %v3521_v7 }
  0xb7   : > { %v1446_v0 = vsel %vm849_vm1, %v4587_v57, %v4585_v42  ;;  %v979_v10 = vadd.f32 %v955_v61, %v928_v9  ;;  %v1410_v62 = vmul.f32 %v2885_v43, %v626_v15  ;;  %v655_v13 = vmul.f32 %v2830_v27, %v3184_v31 }
  0xb8   : > { %v1171_v41 = vsel %vm849_vm1, %v1168_v60, %v4588_v46  ;;  %v1572_v61 = vadd.f32 %v3019_v49, %v1545_v11  ;;  %v1252_v3 = vmul.f32 %v2898_v50, %v3521_v7  ;;  %v4590_v55 = vrot.slane %v4589_v38, 1 }
  0xb9   : > { %v1086_v2 = vadd.f32 %v1037_v1, %v979_v10  ;;  %v1509_v19 = vadd.f32 %v1446_v0, %v1370_v52  ;;  %v3558_v56 = vmul.f32 %v2858_v34, %v626_v15  ;;  %v1465_v37 = vrot.slane %v3546_v39, 2 }
  0xba   : > { %v740_v54 = vsel %vm725_vm2, %v4590_v55, %v739_v21  ;;  %v1467_v6 = vrot.slane %v1410_v62, 2  ;;  %v3563_v59 = vmax.f32 %v1572_v61, 0.0  ;;  %v1334_v58 = vrot.slane %v1298_v40, 1 }
  0xbb   : > { %v1225_v35 = vadd.f32 %v1171_v41, %v1086_v2  ;;  %v813_v16 = vmul.f32 %v2842_v30, %v3184_v31  ;;  %v1536_v28 = vmul.f32 %v2992_v4, %v1509_v19  ;;  %v787_v9 = vadd.f32 %v740_v54, %v655_v13 }
  0xbc   : > { %v1000_v21 = vmul.f32 %v2853_v33, %v3352_v47  ;;  %v1111_v15 = vmul.f32 %v2858_v34, %v3352_v47  ;;  %1662 = vperm.xlu1 %2558, %v3563_v59   ;;  %v954_v42 = vmul.f32 %v2848_v32, %v3352_v47  ;;  %v3577_v17 = vmul.f32 %v2903_v51, %v3561_v45 }
  0xbd   : > { %v1276_v12 = vadd.f32 %v1252_v3, %v1225_v35  ;;  %v870_v5 = vrot.slane %v813_v16, 2  ;;  %v1563_v31 = vadd.f32 %v3019_v49, %v1536_v28  ;;  %v1468_v57 = vsel %vm849_vm1, %v1465_v37, %v1467_v6 }
  0xbe   : > { %v1036_v0 = vrot.slane %v1000_v21, 1  ;;  %v1167_v11 = vrot.slane %v1111_v15, 2  ;;  %v1333_v41 = vrot.slane %v3577_v17, 1  ;;  %v3587_v40 = vmul.f32 %v2885_v43, %v3561_v45 }
  0xbf   : > { %v1383_v10 = vadd.f32 %v1334_v58, %v1276_v12  ;;  %v872_v46 = vsel %vm849_vm1, %v870_v5, %v871_v44  ;;  %v3589_v52 = vmax.f32 %v1563_v31, 0.0  ;;  %v883_v62 = vrot.slane %v3535_v23, 2  ;;  %v623_v44 = vld [vmem:[#allocation2 + $0xc0] sm:$0xff] }
  0xc0   : > { %v1175_v13 = vrot.slane %v3558_v56, 2  ;;  %v927_v61 = vadd.f32 %v872_v46, %v787_v9  ;;  %v1038_v3 = vsel %vm725_vm2, %v1036_v0, %v1037_v1  ;;  %v1251_v38 = vmul.f32 %v2898_v50, %v3561_v45  ;;  %v4591_v56 = vld [vmem:[#allocation27_spill] sm:$0xff] }
  0xc1   : > { %v1522_v2 = vadd.f32 %v1468_v57, %v1383_v10  ;;  %v3598_v55 = vmul.f32 %v2837_v29, %v3561_v45  ;;  %1617 = vperm.xlu0 %2557, %v3589_v52   ;;  %v1169_v19 = vsel %vm849_vm1, %v1167_v11, %v1168_v60  ;;  %v660_v6 = vmul.f32 %v2830_v27, %v623_v44 }
  0xc2   : > { %v978_v54 = vadd.f32 %v954_v42, %v927_v61  ;;  %v926_v35 = vadd.f32 %v870_v5, %v4591_v56  ;;  %v1335_v1 = vsel %vm725_vm2, %v1333_v41, %v1334_v58  ;;  %v1464_v28 = vrot.slane %v3587_v40, 2  ;;  %v3622_v40 = vld [vmem:[#allocation2 + $0xf0] sm:$0xff] }
  0xc3   : > { %v1549_v16 = vmul.f32 %v2992_v4, %v1522_v2  ;;  %v659_v9 = vmul.f32 %v2830_v27, %v4577_v24  ;;  %v704_v12 = vmul.f32 %v2837_v29, %v4577_v24  ;;  %v817_v60 = vmul.f32 %v2842_v30, %v4577_v24 }
  0xc4   : > { %v1085_v21 = vadd.f32 %v1038_v3, %v978_v54  ;;  %v977_v15 = vadd.f32 %v3400_v18, %v926_v35  ;;  %v744_v42 = vrot.slane %v3598_v55, 1  ;;  %v3617_v58 = vmul.f32 %v2848_v32, %v623_v44 }
  0xc5   : > { %v1576_v5 = vadd.f32 %v3019_v49, %v1549_v16  ;;  %v1250_v17 = vmul.f32 %v2898_v50, %v623_v44  ;;  %v742_v10 = vrot.slane %v704_v12, 1  ;;  %v876_v46 = vrot.slane %v817_v60, 2  ;;  %v630_v44 = vld [vmem:[#allocation2 + $0xf8] sm:$0xff] }
  0xc6   : > { %v1224_v31 = vadd.f32 %v1169_v19, %v1085_v21  ;;  %v1084_v57 = vadd.f32 %v1036_v0, %v977_v15  ;;  %v958_v29 = vmul.f32 %v2848_v32, %v3521_v7  ;;  %v1003_v24 = vmul.f32 %v2853_v33, %v3521_v7 }
  0xc7   : > { %v3620_v18 = vmax.f32 %v1576_v5, 0.0  ;;  %v3630_v61 = vmul.f32 %v2858_v34, %v3521_v7  ;;  %v791_v0 = vadd.f32 %v742_v10, %v659_v9  ;;  %v4592_v54 = vrot.slane %v3292_v53, 2 }
  0xc8   : > { %v1275_v2 = vadd.f32 %v1251_v38, %v1224_v31  ;;  %v1223_v3 = vadd.f32 %v1167_v11, %v1084_v57  ;;  %v1466_v56 = vsel %vm849_vm1, %v1464_v28, %v1465_v37  ;;  %v3641_v35 = vadd.f32 %v744_v42, %v660_v6 }
  0xc9   : > { %v879_v19 = vsel %vm849_vm1, %v876_v46, %v4592_v54  ;;  %1682 = vperm.xlu2 %2559, %v3620_v18   ;;  %v1040_v16 = vrot.slane %v1003_v24, 1  ;;  %v1173_v38 = vrot.slane %v3630_v61, 2  ;;  %v1300_v53 = vmul.f32 %v2903_v51, %v3622_v40 }
  0xca   : > { %v1382_v11 = vadd.f32 %v1335_v1, %v1275_v2  ;;  %v1274_v21 = vadd.f32 %v1250_v17, %v1223_v3  ;;  %v931_v9 = vadd.f32 %v879_v19, %v791_v0  ;;  %v3647_v15 = vmul.f32 %v2842_v30, %v630_v44 }
  0xcb   : > { %v3650_v39 = vmul.f32 %v2858_v34, %v630_v44  ;;  %v3654_v37 = vmul.f32 %v2885_v43, %v3622_v40  ;;  %v1413_v6 = vmul.f32 %v2885_v43, %v630_v44  ;;  %v1255_v5 = vmul.f32 %v2898_v50, %v3622_v40  ;;  %v3666_v44 = vld [vmem:[#allocation2 + $0xe8] sm:$0xff] }
  0xcc   : > { %v1521_v12 = vadd.f32 %v1466_v56, %v1382_v11  ;;  %v1381_v60 = vadd.f32 %v1333_v41, %v1274_v21  ;;  %v982_v1 = vadd.f32 %v958_v29, %v931_v9  ;;  %v1176_v17 = vsel %vm849_vm1, %v1173_v38, %v1175_v13 }
  0xcd   : > { %v1337_v31 = vrot.slane %v1300_v53, 1  ;;  %v658_v57 = vmul.f32 %v2830_v27, %v3352_v47  ;;  %v743_v24 = vsel %vm725_vm2, %v741_v48, %v742_v10  ;;  %v816_v41 = vmul.f32 %v2842_v30, %v3352_v47 }
  0xce   : > { %v1548_v61 = vmul.f32 %v2992_v4, %v1521_v12  ;;  %v1520_v2 = vadd.f32 %v1464_v28, %v1381_v60  ;;  %v1089_v3 = vadd.f32 %v1040_v16, %v982_v1  ;;  %v1470_v29 = vrot.slane %v3654_v37, 2 }
  0xcf   : > { %v1472_v13 = vrot.slane %v1413_v6, 2  ;;  %v790_v0 = vadd.f32 %v743_v24, %v658_v57  ;;  %v1002_v27 = vmul.f32 %v2853_v33, %v3561_v45  ;;  %v875_v54 = vrot.slane %v816_v41, 2 }
  0xd0   : > { %v1575_v20 = vadd.f32 %v3019_v49, %v1548_v61  ;;  %v1547_v48 = vmul.f32 %v2992_v4, %v1520_v2  ;;  %v1228_v10 = vadd.f32 %v1176_v17, %v1089_v3  ;;  %v957_v28 = vmul.f32 %v2848_v32, %v3561_v45  ;;  %v627_v17 = vld [vmem:[#allocation2 + $0xe0] sm:$0xff] }
  0xd1   : > { %v1039_v19 = vrot.slane %v1002_v27, 1  ;;  %v1114_v30 = vmul.f32 %v2858_v34, %v3561_v45  ;;  %v3681_v47 = vmul.f32 %v2903_v51, %v3666_v44  ;;  %v877_v21 = vsel %vm849_vm1, %v875_v54, %v876_v46 }
  0xd2   : > { %v3683_v56 = vmax.f32 %v1575_v20, 0.0  ;;  %v1574_v33 = vadd.f32 %v3019_v49, %v1547_v48  ;;  %v1279_v11 = vadd.f32 %v1255_v5, %v1228_v10  ;;  %v1473_v9 = vsel %vm849_vm1, %v1470_v29, %v1472_v13  ;;  %v3734_v20 = vld [vmem:[%s4419_s3 + $0x3] ss:$0 sm:$0xff]  ;;  %v3742_v10 = vld [vmem:[%s4419_s3 + $0x6] ss:$0 sm:$0xff] }
  0xd3   : > { %v930_v53 = vadd.f32 %v877_v21, %v790_v0  ;;  %v1172_v37 = vrot.slane %v1114_v30, 2  ;;  %v1336_v32 = vrot.slane %v3681_v47, 1  ;;  %v1041_v51 = vsel %vm725_vm2, %v1039_v19, %v1040_v16  ;;  %v3706_v16 = vld [vmem:[%s4419_s3] ss:$0 sm:$0xff]  ;;  %v3756_v21 = vld [vmem:[%s4419_s3 + $0x4] ss:$0 sm:$0xff] }
  0xd4   : > { %1677 = vperm.xlu1 %2558, %v3683_v56   ;;  %v3690_v34 = vmax.f32 %v1574_v33, 0.0  ;;  %v1386_v6 = vadd.f32 %v1337_v31, %v1279_v11  ;;  %v3695_v12 = vmul.f32 %v2885_v43, %v3666_v44  ;;  %v888_v60 = vrot.slane %v3647_v15, 2 }
  0xd5   : > { %v1180_v46 = vrot.slane %v3650_v39, 2  ;;  %v981_v1 = vadd.f32 %v957_v28, %v930_v53  ;;  %v1254_v5 = vmul.f32 %v2898_v50, %v3666_v44  ;;  %v1174_v24 = vsel %vm849_vm1, %v1172_v37, %v1173_v38  ;;  %v3719_v38 = vld [vmem:[%s4419_s3 + $0x1] ss:$0 sm:$0xff] }
  0xd6   : > { %1672 = vperm.xlu0 %2557, %v3690_v34   ;;  %v1525_v57 = vadd.f32 %v1473_v9, %v1386_v6  ;;  %v3709_v43 = vmul.f32 %v3706_v16, %v627_v17  ;;  %v929_v61 = vadd.f32 %v875_v54, %v3407_v14  ;;  %v1338_v50 = vsel %vm725_vm2, %v1336_v32, %v1337_v31  ;;  %v3748_v54 = vld [vmem:[%s4419_s3 + $0x2] ss:$0 sm:$0xff] }
  0xd7   : > { %v1088_v2 = vadd.f32 %v1041_v51, %v981_v1  ;;  %v1469_v3 = vrot.slane %v3695_v12, 2  ;;  %v3723_v41 = vmul.f32 %v3719_v38, %v3666_v44  ;;  %v662_v0 = vmul.f32 %v3706_v16, %v3521_v7  ;;  %v3763_v51 = vld [vmem:[#allocation2 + $0x110] sm:$0xff] }
  0xd8   : > { %v1552_v13 = vmul.f32 %v2992_v4, %v1525_v57  ;;  %v980_v14 = vadd.f32 %v3617_v58, %v929_v61  ;;  %v706_v31 = vmul.f32 %v3719_v38, %v3521_v7  ;;  %v3737_v48 = vmul.f32 %v3734_v20, %v627_v17  ;;  %v634_v57 = vld [vmem:[#allocation2 + $0x118] sm:$0xff] }
  0xd9   : > { %v1227_v27 = vadd.f32 %v1174_v24, %v1088_v2  ;;  %v1253_v58 = vmul.f32 %v3742_v10, %v627_v17  ;;  %v820_v28 = vmul.f32 %v3748_v54, %v3521_v7  ;;  %v3760_v9 = vmul.f32 %v3756_v21, %v3622_v40  ;;  %v3768_v7 = vld [vmem:[%s4419_s3 + $0x5] ss:$0 sm:$0xff] }
  0xda   : > { %v1579_v30 = vadd.f32 %v3019_v49, %v1552_v13  ;;  %v1087_v33 = vadd.f32 %v1039_v19, %v980_v14  ;;  %v745_v11 = vrot.slane %v706_v31, 1  ;;  %v1471_v6 = vsel %vm849_vm1, %v1469_v3, %v1470_v29 }
  0xdb   : > { %v1278_v53 = vadd.f32 %v1254_v5, %v1227_v27  ;;  %v881_v12 = vrot.slane %v820_v28, 2  ;;  %v3772_v19 = vmul.f32 %v3768_v7, %v3622_v40  ;;  %v961_v29 = vmul.f32 %v3734_v20, %v3622_v40 }
  0xdc   : > { %v3774_v1 = vmax.f32 %v1579_v30, 0.0  ;;  %v1226_v17 = vadd.f32 %v1172_v37, %v1087_v33  ;;  %v794_v24 = vadd.f32 %v745_v11, %v662_v0  ;;  %v747_v61 = vrot.slane %v3723_v41, 1  ;;  %v3788_v0 = vld [vmem:[%s4419_s3 + $0x7] ss:$0 sm:$0xff] }
  0xdd   : > { %v1385_v5 = vadd.f32 %v1338_v50, %v1278_v53  ;;  %v884_v2 = vsel %vm849_vm1, %v881_v12, %v883_v62  ;;  %v1178_v13 = vrot.slane %v3772_v19, 2  ;;  %v1043_v37 = vrot.slane %v3760_v9, 1  ;;  %v3798_v62 = vld [vmem:[%s4419_s3 + $0x8] ss:$0 sm:$0xff] }
  0xde   : > { %1697 = vperm.xlu2 %2559, %v3774_v1   ;;  %v1277_v14 = vadd.f32 %v1253_v58, %v1226_v17  ;;  %v934_v31 = vadd.f32 %v884_v2, %v794_v24  ;;  %v1302_v50 = vmul.f32 %v3788_v0, %v3763_v51  ;;  %v3793_v23 = vmul.f32 %v3768_v7, %v634_v57 }
  0xdf   : > { %v1524_v27 = vadd.f32 %v1471_v6, %v1385_v5  ;;  %v3802_v58 = vmul.f32 %v3798_v62, %v3763_v51  ;;  %v1416_v28 = vmul.f32 %v3798_v62, %v634_v57  ;;  %v1258_v9 = vmul.f32 %v3742_v10, %v3763_v51 }
  0xe0   : > { %v1384_v30 = vadd.f32 %v1336_v32, %v1277_v14  ;;  %v985_v33 = vadd.f32 %v961_v29, %v934_v31  ;;  %v661_v53 = vmul.f32 %v3706_v16, %v3561_v45  ;;  %v1181_v19 = vsel %vm849_vm1, %v1178_v13, %v1180_v46  ;;  %v3819_v29 = vld [vmem:[#allocation2 + $0x108] sm:$0xff] }
  0xe1   : > { %v1551_v6 = vmul.f32 %v2992_v4, %v1524_v27  ;;  %v1340_v17 = vrot.slane %v1302_v50, 1  ;;  %v746_v57 = vsel %vm725_vm2, %v744_v42, %v745_v11  ;;  %v1475_v24 = vrot.slane %v3802_v58, 2 }
  0xe2   : > { %v1523_v47 = vadd.f32 %v1469_v3, %v1384_v30  ;;  %v1092_v32 = vadd.f32 %v1043_v37, %v985_v33  ;;  %v819_v5 = vmul.f32 %v3748_v54, %v3561_v45  ;;  %v1477_v14 = vrot.slane %v1416_v28, 2 }
  0xe3   : > { %v1578_v2 = vadd.f32 %v3019_v49, %v1551_v6  ;;  %v793_v39 = vadd.f32 %v746_v57, %v661_v53  ;;  %v1004_v46 = vmul.f32 %v3756_v21, %v3666_v44  ;;  %v1117_v3 = vmul.f32 %v3768_v7, %v3666_v44 }
  0xe4   : > { %v1550_v55 = vmul.f32 %v2992_v4, %v1523_v47  ;;  %v1231_v31 = vadd.f32 %v1181_v19, %v1092_v32  ;;  %v880_v42 = vrot.slane %v819_v5, 2  ;;  %v960_v50 = vmul.f32 %v3734_v20, %v3666_v44 }
  0xe5   : > { %v3829_v11 = vmax.f32 %v1578_v2, 0.0  ;;  %v1042_v45 = vrot.slane %v1004_v46, 1  ;;  %v1301_v27 = vmul.f32 %v3788_v0, %v3819_v29  ;;  %v1177_v4 = vrot.slane %v1117_v3, 2 }
  0xe6   : > { %v1577_v58 = vadd.f32 %v3019_v49, %v1550_v55  ;;  %v1282_v28 = vadd.f32 %v1258_v9, %v1231_v31  ;;  %v882_v30 = vsel %vm849_vm1, %v880_v42, %v881_v12  ;;  %v1478_v33 = vsel %vm849_vm1, %v1475_v24, %v1477_v14  ;;  %v3849_v14 = vld [vmem:[#allocation2 + $0x100] sm:$0xff] }
  0xe7   : > { %1692 = vperm.xlu1 %2558, %v3829_v11   ;;  %v933_v53 = vadd.f32 %v882_v30, %v793_v39  ;;  %v1339_v6 = vrot.slane %v1301_v27, 1  ;;  %v1414_v19 = vmul.f32 %v3798_v62, %v3819_v29  ;;  %v1044_v32 = vsel %vm725_vm2, %v1042_v45, %v1043_v37  ;;  %v3877_v30 = vld [vmem:[%s4421_s5] ss:$0 sm:$0xff] }
  0xe8   : > { %v3841_v57 = vmax.f32 %v1577_v58, 0.0  ;;  %v1389_v47 = vadd.f32 %v1340_v17, %v1282_v28  ;;  %v932_v49 = vadd.f32 %v880_v42, %v3641_v35  ;;  %v1185_v9 = vrot.slane %v3793_v23, 2  ;;  %v3863_v42 = vld [vmem:[%s4420_s4] ss:$0 sm:$0xff]  ;;  %v637_v58 = vld [vmem:[#allocation2 + $0x130] sm:$0xff] }
  0xe9   : > { %v984_v12 = vadd.f32 %v960_v50, %v933_v53  ;;  %v1179_v5 = vsel %vm849_vm1, %v1177_v4, %v1178_v13  ;;  %v1257_v2 = vmul.f32 %v3742_v10, %v3819_v29  ;;  %v1341_v46 = vsel %vm725_vm2, %v1339_v6, %v1340_v17 }
  0xea   : > { %1687 = vperm.xlu0 %2557, %v3841_v57   ;;  %v1528_v39 = vadd.f32 %v1478_v33, %v1389_v47  ;;  %v1474_v55 = vrot.slane %v1414_v19, 2  ;;  %v983_v37 = vadd.f32 %v3737_v48, %v932_v49  ;;  %v665_v35 = vmul.f32 %v3706_v16, %v3622_v40 }
  0xeb   : > { %v1091_v31 = vadd.f32 %v1044_v32, %v984_v12  ;;  %v708_v13 = vmul.f32 %v3719_v38, %v3622_v40  ;;  %v823_v23 = vmul.f32 %v3748_v54, %v3622_v40  ;;  %v1256_v48 = vmul.f32 %v3742_v10, %v3849_v14  ;;  %v638_v32 = vld [vmem:[#allocation2 + $0x138] sm:$0xff] }
  0xec   : > { %v1555_v17 = vmul.f32 %v3863_v42, %v1528_v39  ;;  %v1090_v3 = vadd.f32 %v1042_v45, %v983_v37  ;;  %v1007_v50 = vmul.f32 %v3756_v21, %v3763_v51  ;;  %v3872_v40 = vmul.f32 %v3768_v7, %v3763_v51 }
  0xed   : > { %v1230_v27 = vadd.f32 %v1179_v5, %v1091_v31  ;;  %v748_v38 = vrot.slane %v708_v13, 1  ;;  %v886_v28 = vrot.slane %v823_v23, 2  ;;  %v1476_v33 = vsel %vm849_vm1, %v1474_v55, %v1475_v24 }
  0xee   : > { %v1582_v45 = vadd.f32 %v3877_v30, %v1555_v17  ;;  %v1229_v53 = vadd.f32 %v1177_v4, %v1090_v3  ;;  %v964_v19 = vmul.f32 %v3734_v20, %v3763_v51  ;;  %v1183_v5 = vrot.slane %v3872_v40, 2 }
  0xef   : > { %v1281_v47 = vadd.f32 %v1257_v2, %v1230_v27  ;;  %v797_v49 = vadd.f32 %v748_v38, %v665_v35  ;;  %v889_v12 = vsel %vm849_vm1, %v886_v28, %v888_v60  ;;  %v3890_v31 = vmul.f32 %v3788_v0, %v637_v58 }
  0xf0   : > { %v3887_v39 = vmax.f32 %v1582_v45, 0.0  ;;  %v1280_v37 = vadd.f32 %v1256_v48, %v1229_v53  ;;  %v3893_v24 = vmul.f32 %v3798_v62, %v637_v58  ;;  %v795_v51 = vadd.f32 %v747_v61, %v3709_v43 }
  0xf1   : > { %v1388_v4 = vadd.f32 %v1341_v46, %v1281_v47  ;;  %v937_v2 = vadd.f32 %v889_v12, %v797_v49  ;;  %v1046_v15 = vrot.slane %v1007_v50, 1  ;;  %v1261_v35 = vmul.f32 %v3742_v10, %v637_v58 }
  0xf2   : > { %1712 = vperm.xlu2 %2559, %v3887_v39   ;;  %v1387_v60 = vadd.f32 %v1339_v6, %v1280_v37  ;;  %v1419_v13 = vmul.f32 %v3798_v62, %v638_v32  ;;  %v664_v23 = vmul.f32 %v3706_v16, %v3666_v44  ;;  %v1186_v48 = vsel %vm849_vm1, %v1183_v5, %v1185_v9  ;;  %v636_v16 = vld [vmem:[#allocation2 + $0x128] sm:$0xff] }
  0xf3   : > { %v1527_v17 = vadd.f32 %v1476_v33, %v1388_v4  ;;  %v988_v3 = vadd.f32 %v964_v19, %v937_v2  ;;  %v749_v43 = vsel %vm725_vm2, %v747_v61, %v748_v38  ;;  %v1343_v50 = vrot.slane %v3890_v31, 1 }
  0xf4   : > { %v1526_v46 = vadd.f32 %v1474_v55, %v1387_v60  ;;  %v1480_v6 = vrot.slane %v3893_v24, 2  ;;  %v822_v27 = vmul.f32 %v3748_v54, %v3666_v44  ;;  %v796_v45 = vadd.f32 %v749_v43, %v664_v23 }
  0xf5   : > { %v1554_v58 = vmul.f32 %v3863_v42, %v1527_v17  ;;  %v1095_v40 = vadd.f32 %v1046_v15, %v988_v3  ;;  %v1006_v9 = vmul.f32 %v3756_v21, %v3819_v29  ;;  %v1482_v33 = vrot.slane %v1419_v13, 2 }
  0xf6   : > { %v1553_v41 = vmul.f32 %v3863_v42, %v1526_v46  ;;  %v885_v61 = vrot.slane %v822_v27, 2  ;;  %v1120_v55 = vmul.f32 %v3768_v7, %v3819_v29  ;;  %v963_v44 = vmul.f32 %v3734_v20, %v3819_v29 }
  0xf7   : > { %v1581_v38 = vadd.f32 %v3877_v30, %v1554_v58  ;;  %v1234_v53 = vadd.f32 %v1186_v48, %v1095_v40  ;;  %v1045_v54 = vrot.slane %v1006_v9, 1  ;;  %v1303_v21 = vmul.f32 %v3788_v0, %v636_v16 }
  0xf8   : > { %v1580_v19 = vadd.f32 %v3877_v30, %v1553_v41  ;;  %v887_v47 = vsel %vm849_vm1, %v885_v61, %v886_v28  ;;  %v1182_v32 = vrot.slane %v1120_v55, 2  ;;  %v962_v12 = vmul.f32 %v3734_v20, %v3849_v14  ;;  %v635_v14 = vld [vmem:[#allocation2 + $0x120] sm:$0xff] }
  0xf9   : > { %v3923_v49 = vmax.f32 %v1581_v38, 0.0  ;;  %v1285_v7 = vadd.f32 %v1261_v35, %v1234_v53  ;;  %v936_v37 = vadd.f32 %v887_v47, %v796_v45  ;;  %v1483_v24 = vsel %vm849_vm1, %v1480_v6, %v1482_v33  ;;  %v4596_v47 = vld [vmem:[#allocation26_spill] sm:$0xff] }
  0xfa   : > { %v3927_v31 = vmax.f32 %v1580_v19, 0.0  ;;  %v1047_v29 = vsel %vm725_vm2, %v1045_v54, %v1046_v15  ;;  %v1417_v4 = vmul.f32 %v3798_v62, %v636_v16  ;;  %v935_v0 = vadd.f32 %v885_v61, %v795_v51 }
  0xfb   : > { %1707 = vperm.xlu1 %2558, %v3923_v49   ;;  %v1392_v28 = vadd.f32 %v1343_v50, %v1285_v7  ;;  %v987_v2 = vadd.f32 %v963_v44, %v936_v37  ;;  %v1184_v60 = vsel %vm849_vm1, %v1182_v32, %v1183_v5  ;;  %v1342_v20 = vrot.slane %v1303_v21, 1  ;;  %v4593_v44 = vld [vmem:[#allocation21_spill] sm:$0xff]  ;;  %v3976_v7 = vpop.permute.xlu0 %1612 }
  0xfc   : > { %1702 = vperm.xlu0 %2557, %v3927_v31   ;;  %v1260_v23 = vmul.f32 %v3742_v10, %v636_v16  ;;  %v986_v17 = vadd.f32 %v962_v12, %v935_v0  ;;  %v1479_v3 = vrot.slane %v1417_v4, 2  ;;  %v1259_v43 = vmul.f32 %v3742_v10, %v635_v14  ;;  %v1623_v12 = vpop.permute.xlu1 %1622 }
  0xfd   : > { %v1531_v35 = vadd.f32 %v1483_v24, %v1392_v28  ;;  %v1094_v13 = vadd.f32 %v1047_v29, %v987_v2  ;;  %v1344_v51 = vsel %vm725_vm2, %v1342_v20, %v1343_v50  ;;  %v2637_v53 = vmov 1  }
  0xfe   : > { %v1093_v48 = vadd.f32 %v1045_v54, %v986_v17  ;;  %v1481_v58 = vsel %vm849_vm1, %v1479_v3, %v1480_v6  ;;  %v3958_v54 = vpop.permute.xlu2 %1637  ;;  %v2638_v2 = vmov 2  }
  0xff   : > { %v1558_v15 = vmul.f32 %v3863_v42, %v1531_v35  ;;  %v1233_v62 = vadd.f32 %v1184_v60, %v1094_v13 }
 0x100   : > { %v1232_v5 = vadd.f32 %v1182_v32, %v1093_v48 }
 0x101   : > { %v1585_v46 = vadd.f32 %v3877_v30, %v1558_v15  ;;  %v1284_v27 = vadd.f32 %v1260_v23, %v1233_v62  ;;  %v4010_v23 = vld [vmem:[%s4422_s6] sm:$0xf] }
 0x102   : > { %v1283_v16 = vadd.f32 %v1259_v43, %v1232_v5  ;;  %v4018_v15 = vperm.slane %v4010_v23, 1 }
 0x103   : > { %v3941_v40 = vmax.f32 %v1585_v46, 0.0  ;;  %v1391_v45 = vadd.f32 %v1344_v51, %v1284_v27 }
 0x104   : > { %v1390_v41 = vadd.f32 %v1342_v20, %v1283_v16  ;;  %v3983_v24 = vpop.permute.xlu1 %1627 }
 0x105   : > { %1727 = vperm.xlu2 %2559, %v3941_v40   ;;  %v1530_v9 = vadd.f32 %v1481_v58, %v1391_v45 }
 0x106   : > { %v1529_v61 = vadd.f32 %v1479_v3, %v1390_v41  ;;  %v3963_v19 = vpop.permute.xlu2 %1652  ;;  %v4015_v3 = vperm.slane %v4010_v23, 0 }
 0x107   : > { %v1557_v33 = vmul.f32 %v3863_v42, %v1530_v9  ;;  %v3985_v29 = vpop.permute.xlu0 %1642 }
 0x108   : > { %v1556_v50 = vmul.f32 %v3863_v42, %v1529_v61  ;;  %v4594_v42 = vld [vmem:[#allocation25_spill] sm:$0xff]  ;;  %v1733_v48 = vmul.f32 %v4015_v3, %v1623_v12 }
 0x109   : > { %v1584_v10 = vadd.f32 %v3877_v30, %v1557_v33 }
 0x10a   : > { %v1583_v38 = vadd.f32 %v3877_v30, %v1556_v50  ;;  %v4595_v30 = vld [vmem:[#allocation18_spill] sm:$0xff] }
 0x10b   : > { %v3947_v55 = vmax.f32 %v1584_v10, 0.0 }
 0x10c   : > { %v3951_v6 = vmax.f32 %v1583_v38, 0.0 }
 0x10d   : > { %1722 = vperm.xlu1 %2558, %v3947_v55   ;;  %2562 = vset.pattern.permute.xlu2 %v2637_v53 }
 0x10e   : > { %1788 = vperm.xlu2 %2562, %v4593_v44   ;;  %1717 = vperm.xlu0 %2557, %v3951_v6   ;;  %v3968_v32 = vpop.permute.xlu2 %1667 }
 0x115   : > { %2561 = vset.pattern.permute.xlu1 %v2637_v53 }
 0x116   : > { %1784 = vperm.xlu1 %2561, %v3589_v52   ;;  %1796 = vperm.xlu2 %2562, %v3527_v26   ;;  %v1633_v21 = vpop.permute.xlu2 %1632 }
 0x117   : > { %2560 = vset.pattern.permute.xlu0 %v2637_v53  ;;  %v1735_v58 = vmul.f32 %v4015_v3, %v1633_v21 }
 0x118   : > { %1780 = vperm.xlu0 %2560, %v4594_v42  }
 0x11c   : > { %v1648_v28 = vpop.permute.xlu1 %1647 }
 0x11d   : > { %v1738_v61 = vmul.f32 %v4015_v3, %v1648_v28 }
 0x11e   : > { %1792 = vperm.xlu1 %2561, %v3332_v8   ;;  %1808 = vperm.xlu2 %2562, %v3467_v36  }
 0x120   : > { %1800 = vperm.xlu0 %2560, %v4595_v30  }
 0x122   : > { %v3994_v0 = vpop.permute.xlu0 %1657 }
 0x123   : > { %v3981_v37 = vpop.permute.xlu2 %1682 }
 0x126   : > { %1804 = vperm.xlu1 %2561, %v3368_v63   ;;  %1820 = vperm.xlu2 %2562, %v3563_v59  }
 0x128   : > { %1812 = vperm.xlu0 %2560, %v4596_v47  }
 0x12e   : > { %1816 = vperm.xlu1 %2561, %v3500_v25   ;;  %1832 = vperm.xlu2 %2562, %v3683_v56   ;;  %v1663_v20 = vpop.permute.xlu1 %1662 }
 0x12f   : > { %v1741_v21 = vmul.f32 %v4015_v3, %v1663_v20 }
 0x130   : > { %1824 = vperm.xlu0 %2560, %v3410_v22  }
 0x133   : > { %v1618_v14 = vpop.permute.xlu0 %1617 }
 0x136   : > { %1828 = vperm.xlu1 %2561, %v3690_v34   ;;  %1844 = vperm.xlu2 %2562, %v3829_v11  }
 0x138   : > { %1836 = vperm.xlu0 %2560, %v3620_v18   ;;  %v3990_v4 = vpop.permute.xlu2 %1697 }
 0x13e   : > { %1840 = vperm.xlu1 %2561, %v3841_v57   ;;  %1856 = vperm.xlu2 %2562, %v3923_v49  }
 0x140   : > { %1848 = vperm.xlu0 %2560, %v3774_v1  }
 0x146   : > { %1852 = vperm.xlu1 %2561, %v3927_v31   ;;  %1868 = vperm.xlu2 %2562, %v3947_v55   ;;  %v1678_v13 = vpop.permute.xlu1 %1677 }
 0x148   : > { %1860 = vperm.xlu0 %2560, %v3887_v39   ;;  %v4012_v17 = vpop.permute.xlu0 %1672 }
 0x14c   : > { %v3997_v60 = vpop.permute.xlu2 %1712 }
 0x14e   : > { %1864 = vperm.xlu1 %2561, %v3951_v6   ;;  %2564 = vset.pattern.permute.xlu2 %v2638_v2 }
 0x14f   : > { %1929 = vperm.xlu2 %2564, %v3589_v52  }
 0x150   : > { %1872 = vperm.xlu0 %2560, %v3941_v40  }
 0x156   : > { %2563 = vset.pattern.permute.xlu1 %v2638_v2 }
 0x157   : > { %1925 = vperm.xlu1 %2563, %v4594_v42   ;;  %1941 = vperm.xlu2 %2564, %v3527_v26  }
 0x158   : > { %2565 = vset.pattern.permute.xlu0 %v2638_v2 }
 0x159   : > { %1933 = vperm.xlu0 %2565, %v4593_v44   ;;  %v1693_v51 = vpop.permute.xlu1 %1692 }
 0x15c   : > { %v4027_v27 = vpop.permute.xlu0 %1687 }
 0x15f   : > { %1937 = vperm.xlu1 %2563, %v3332_v8   ;;  %v4003_v35 = vpop.permute.xlu2 %1727  ;;  %1949 = vperm.xlu2 %2564, %v3368_v63  }
 0x161   : > { %1953 = vperm.xlu0 %2565, %v3467_v36  }
 0x167   : > { %1945 = vperm.xlu1 %2563, %v4595_v30   ;;  %1961 = vperm.xlu2 %2564, %v3500_v25  }
 0x168   : > { %v1789_v62 = vpop.permute.xlu2 %1788 }
 0x169   : > { %1965 = vperm.xlu0 %2565, %v3563_v59   ;;  %v1878_v43 = vmul.f32 %v4018_v15, %v1789_v62 }
 0x16b   : > { %v4025_v46 = vadd.f32 %v1878_v43, %v1733_v48  ;;  %v1732_v43 = vmul.f32 %v4015_v3, %v1618_v14  ;;  %v2639_v14 = vmov 3  }
 0x16d   : > { %v1708_v9 = vpop.permute.xlu1 %1707 }
 0x16e   : > { %v4037_v41 = vpop.permute.xlu0 %1702 }
 0x16f   : > { %1957 = vperm.xlu1 %2563, %v4596_v47   ;;  %1973 = vperm.xlu2 %2564, %v3690_v34  }
 0x170   : > { %v1797_v5 = vpop.permute.xlu2 %1796 }
 0x171   : > { %1977 = vperm.xlu0 %2565, %v3683_v56   ;;  %v1880_v45 = vmul.f32 %v4018_v15, %v1797_v5  ;;  %v1744_v5 = vmul.f32 %v4015_v3, %v1678_v13 }
 0x173   : > { %v4034_v16 = vadd.f32 %v1880_v45, %v1735_v58 }
 0x177   : > { %1969 = vperm.xlu1 %2563, %v3410_v22   ;;  %1985 = vperm.xlu2 %2564, %v3841_v57  }
 0x178   : > { %v1809_v33 = vpop.permute.xlu2 %1808 }
 0x179   : > { %1989 = vperm.xlu0 %2565, %v3829_v11   ;;  %v1883_v10 = vmul.f32 %v4018_v15, %v1809_v33  ;;  %v1731_v33 = vmul.f32 %v4015_v3, %v3976_v7  ;;  %v1747_v7 = vmul.f32 %v4015_v3, %v1693_v51 }
 0x17b   : > { %v4043_v50 = vadd.f32 %v1883_v10, %v1738_v61 }
 0x17f   : > { %v4045_v38 = vpop.permute.xlu1 %1722  ;;  %1981 = vperm.xlu1 %2563, %v3620_v18   ;;  %1997 = vperm.xlu2 %2564, %v3927_v31  }
 0x180   : > { %v1821_v53 = vpop.permute.xlu2 %1820  ;;  %v4051_v12 = vpop.permute.xlu0 %1717 }
 0x181   : > { %2001 = vperm.xlu0 %2565, %v3923_v49   ;;  %v1886_v28 = vmul.f32 %v4018_v15, %v1821_v53 }
 0x183   : > { %v4054_v2 = vadd.f32 %v1886_v28, %v1741_v21 }
 0x187   : > { %1993 = vperm.xlu1 %2563, %v3774_v1   ;;  %2009 = vperm.xlu2 %2564, %v3951_v6  }
 0x188   : > { %v1785_v62 = vpop.permute.xlu1 %1784  ;;  %v1833_v48 = vpop.permute.xlu2 %1832 }
 0x189   : > { %2013 = vperm.xlu0 %2565, %v3947_v55   ;;  %v1877_v20 = vmul.f32 %v4018_v15, %v1785_v62  ;;  %v1889_v58 = vmul.f32 %v4018_v15, %v1833_v48  ;;  %v1734_v62 = vmul.f32 %v4015_v3, %v3983_v24 }
 0x18a   : > { %v1781_v45 = vpop.permute.xlu0 %1780 }
 0x18b   : > { %v4065_v61 = vadd.f32 %v1877_v20, %v1732_v43  ;;  %v1876_v10 = vmul.f32 %v4018_v15, %v1781_v45  ;;  %v4068_v53 = vadd.f32 %v1889_v58, %v1744_v5  ;;  %v1736_v20 = vmul.f32 %v4015_v3, %v3958_v54 }
 0x18d   : > { %v4070_v21 = vadd.f32 %v1876_v10, %v1731_v33  ;;  %v1750_v10 = vmul.f32 %v4015_v3, %v1708_v9 }
 0x18f   : > { %2005 = vperm.xlu1 %2563, %v3887_v39   ;;  %2566 = vset.pattern.permute.xlu2 %v2639_v14 }
 0x190   : > { %v1793_v13 = vpop.permute.xlu1 %1792  ;;  %v1845_v28 = vpop.permute.xlu2 %1844  ;;  %2070 = vperm.xlu2 %2566, %v4594_v42  }
 0x191   : > { %2567 = vset.pattern.permute.xlu0 %v2639_v14  ;;  %v1879_v48 = vmul.f32 %v4018_v15, %v1793_v13  ;;  %v1892_v43 = vmul.f32 %v4018_v15, %v1845_v28 }
 0x192   : > { %2074 = vperm.xlu0 %2567, %v3589_v52   ;;  %v1801_v5 = vpop.permute.xlu0 %1800  ;;  %v1737_v52 = vmul.f32 %v4015_v3, %v3985_v29 }
 0x193   : > { %v4082_v58 = vadd.f32 %v1879_v48, %v1734_v62  ;;  %v1881_v42 = vmul.f32 %v4018_v15, %v1801_v5  ;;  %v4085_v45 = vadd.f32 %v1892_v43, %v1747_v7  ;;  %v1739_v62 = vmul.f32 %v4015_v3, %v3963_v19 }
 0x194   : > { %v1753_v19 = vmul.f32 %v4015_v3, %v4045_v38 }
 0x195   : > { %v4087_v24 = vadd.f32 %v1881_v42, %v1736_v20 }
 0x197   : > { %2017 = vperm.xlu1 %2563, %v3941_v40  }
 0x198   : > { %v1805_v51 = vpop.permute.xlu1 %1804  ;;  %v1857_v33 = vpop.permute.xlu2 %1856  ;;  %2082 = vperm.xlu2 %2566, %v3332_v8  }
 0x199   : > { %v1882_v54 = vmul.f32 %v4018_v15, %v1805_v51  ;;  %v1895_v13 = vmul.f32 %v4018_v15, %v1857_v33 }
 0x19a   : > { %2094 = vperm.xlu0 %2567, %v3368_v63   ;;  %v1813_v28 = vpop.permute.xlu0 %1812  ;;  %v1740_v63 = vmul.f32 %v4015_v3, %v3994_v0  ;;  %v4121_v0 = vperm.slane %v4010_v23, 2 }
 0x19b   : > { %v1906_v7 = vadd.f32 %v1882_v54, %v1737_v52  ;;  %v1884_v48 = vmul.f32 %v4018_v15, %v1813_v28  ;;  %v4100_v43 = vadd.f32 %v1895_v13, %v1750_v10  ;;  %v1745_v13 = vmul.f32 %v4015_v3, %v3981_v37 }
 0x19d   : > { %v4102_v8 = vadd.f32 %v1884_v48, %v1739_v62 }
 0x19f   : > { %2568 = vset.pattern.permute.xlu1 %v2639_v14  ;;  %v1742_v14 = vmul.f32 %v4015_v3, %v3968_v32 }
 0x1a0   : > { %v1817_v29 = vpop.permute.xlu1 %1816  ;;  %2078 = vperm.xlu1 %2568, %v4593_v44   ;;  %v1869_v9 = vpop.permute.xlu2 %1868  ;;  %2090 = vperm.xlu2 %2566, %v4595_v30  }
 0x1a1   : > { %v1885_v5 = vmul.f32 %v4018_v15, %v1817_v29  ;;  %v1898_v20 = vmul.f32 %v4018_v15, %v1869_v9 }
 0x1a2   : > { %2106 = vperm.xlu0 %2567, %v3500_v25   ;;  %v1825_v42 = vpop.permute.xlu0 %1824  ;;  %v1743_v25 = vmul.f32 %v4015_v3, %v4012_v17 }
 0x1a3   : > { %v1909_v44 = vadd.f32 %v1885_v5, %v1740_v63  ;;  %v1887_v51 = vmul.f32 %v4018_v15, %v1825_v42  ;;  %v4116_v30 = vadd.f32 %v1898_v20, %v1753_v19 }
 0x1a5   : > { %v4118_v33 = vadd.f32 %v1887_v51, %v1742_v14 }
 0x1a8   : > { %v1829_v38 = vpop.permute.xlu1 %1828  ;;  %2086 = vperm.xlu1 %2568, %v3527_v26   ;;  %2102 = vperm.xlu2 %2566, %v4596_v47  }
 0x1a9   : > { %v1888_v32 = vmul.f32 %v4018_v15, %v1829_v38  ;;  %v1930_v52 = vpop.permute.xlu2 %1929 }
 0x1aa   : > { %2118 = vperm.xlu0 %2567, %v3690_v34   ;;  %v1837_v10 = vpop.permute.xlu0 %1836  ;;  %v2022_v54 = vmul.f32 %v4121_v0, %v1930_v52  ;;  %v1746_v34 = vmul.f32 %v4015_v3, %v4027_v27 }
 0x1ab   : > { %v1912_v28 = vadd.f32 %v1888_v32, %v1743_v25  ;;  %v1890_v62 = vmul.f32 %v4018_v15, %v1837_v10 }
 0x1ac   : > { %v4134_v26 = vadd.f32 %v2022_v54, %v4065_v61  ;;  %v1748_v61 = vmul.f32 %v4015_v3, %v3990_v4 }
 0x1ad   : > { %v4136_v47 = vadd.f32 %v1890_v62, %v1745_v13 }
 0x1b0   : > { %v1841_v17 = vpop.permute.xlu1 %1840  ;;  %2098 = vperm.xlu1 %2568, %v3467_v36   ;;  %2114 = vperm.xlu2 %2566, %v3410_v22  }
 0x1b1   : > { %v1891_v48 = vmul.f32 %v4018_v15, %v1841_v17  ;;  %v1942_v29 = vpop.permute.xlu2 %1941 }
 0x1b2   : > { %2130 = vperm.xlu0 %2567, %v3841_v57   ;;  %v1849_v37 = vpop.permute.xlu0 %1848  ;;  %v2025_v9 = vmul.f32 %v4121_v0, %v1942_v29  ;;  %v1749_v57 = vmul.f32 %v4015_v3, %v4037_v41 }
 0x1b3   : > { %v1915_v63 = vadd.f32 %v1891_v48, %v1746_v34  ;;  %v1893_v19 = vmul.f32 %v4018_v15, %v1849_v37 }
 0x1b4   : > { %v4149_v36 = vadd.f32 %v2025_v9, %v4034_v16  ;;  %v1751_v16 = vmul.f32 %v4015_v3, %v3997_v60 }
 0x1b5   : > { %v4151_v22 = vadd.f32 %v1893_v19, %v1748_v61 }
 0x1b8   : > { %v1853_v27 = vpop.permute.xlu1 %1852  ;;  %2110 = vperm.xlu1 %2568, %v3563_v59   ;;  %2126 = vperm.xlu2 %2566, %v3620_v18  }
 0x1b9   : > { %v1894_v5 = vmul.f32 %v4018_v15, %v1853_v27  ;;  %v1950_v20 = vpop.permute.xlu2 %1949 }
 0x1ba   : > { %2142 = vperm.xlu0 %2567, %v3927_v31   ;;  %v1861_v4 = vpop.permute.xlu0 %1860  ;;  %v2027_v42 = vmul.f32 %v4121_v0, %v1950_v20  ;;  %v1752_v31 = vmul.f32 %v4015_v3, %v4051_v12  ;;  %v4216_v20 = vperm.slane %v4010_v23, 3  ;;  %v4229_v23 = vld [vmem:[%s4424_s8] ss:$0 sm:$0xff] }
 0x1bb   : > { %v1918_v14 = vadd.f32 %v1894_v5, %v1749_v57  ;;  %v1896_v51 = vmul.f32 %v4018_v15, %v1861_v4 }
 0x1bc   : > { %v4163_v59 = vadd.f32 %v2027_v42, %v1906_v7  ;;  %v1754_v7 = vmul.f32 %v4015_v3, %v4003_v35 }
 0x1bd   : > { %v4165_v18 = vadd.f32 %v1896_v51, %v1751_v16 }
 0x1c0   : > { %v1865_v38 = vpop.permute.xlu1 %1864  ;;  %2122 = vperm.xlu1 %2568, %v3683_v56   ;;  %2138 = vperm.xlu2 %2566, %v3774_v1  }
 0x1c1   : > { %v1897_v41 = vmul.f32 %v4018_v15, %v1865_v38  ;;  %v1962_v25 = vpop.permute.xlu2 %1961 }
 0x1c2   : > { %2154 = vperm.xlu0 %2567, %v3951_v6   ;;  %v1873_v60 = vpop.permute.xlu0 %1872  ;;  %v2030_v32 = vmul.f32 %v4121_v0, %v1962_v25 }
 0x1c3   : > { %v1921_v52 = vadd.f32 %v1897_v41, %v1752_v31  ;;  %v1899_v10 = vmul.f32 %v4018_v15, %v1873_v60 }
 0x1c4   : > { %v4177_v56 = vadd.f32 %v2030_v32, %v1909_v44 }
 0x1c5   : > { %v4179_v1 = vadd.f32 %v1899_v10, %v1754_v7 }
 0x1c8   : > { %2134 = vperm.xlu1 %2568, %v3829_v11   ;;  %2150 = vperm.xlu2 %2566, %v3887_v39  }
 0x1c9   : > { %v1926_v12 = vpop.permute.xlu1 %1925  ;;  %v1974_v54 = vpop.permute.xlu2 %1973 }
 0x1ca   : > { %v2033_v6 = vmul.f32 %v4121_v0, %v1974_v54  ;;  %v2021_v5 = vmul.f32 %v4121_v0, %v1926_v12 }
 0x1cb   : > { %v1934_v13 = vpop.permute.xlu0 %1933 }
 0x1cc   : > { %v2023_v62 = vmul.f32 %v4121_v0, %v1934_v13  ;;  %v4185_v17 = vadd.f32 %v2033_v6, %v1912_v28  ;;  %v2045_v42 = vadd.f32 %v2021_v5, %v4070_v21 }
 0x1ce   : > { %v4188_v35 = vadd.f32 %v2023_v62, %v4025_v46 }
 0x1d0   : > { %2146 = vperm.xlu1 %2568, %v3923_v49   ;;  %2162 = vperm.xlu2 %2566, %v3941_v40  }
 0x1d1   : > { %v1938_v3 = vpop.permute.xlu1 %1937  ;;  %v1986_v11 = vpop.permute.xlu2 %1985 }
 0x1d2   : > { %v2036_v39 = vmul.f32 %v4121_v0, %v1986_v11  ;;  %v2024_v21 = vmul.f32 %v4121_v0, %v1938_v3 }
 0x1d3   : > { %v1954_v15 = vpop.permute.xlu0 %1953 }
 0x1d4   : > { %v2028_v44 = vmul.f32 %v4121_v0, %v1954_v15  ;;  %v4194_v34 = vadd.f32 %v2036_v39, %v1915_v63  ;;  %v2048_v7 = vadd.f32 %v2024_v21, %v4082_v58 }
 0x1d6   : > { %v4197_v48 = vadd.f32 %v2028_v44, %v4043_v50 }
 0x1d8   : > { %2158 = vperm.xlu1 %2568, %v3947_v55  }
 0x1d9   : > { %v1946_v46 = vpop.permute.xlu1 %1945  ;;  %v1998_v28 = vpop.permute.xlu2 %1997 }
 0x1da   : > { %v2039_v49 = vmul.f32 %v4121_v0, %v1998_v28  ;;  %v2026_v13 = vmul.f32 %v4121_v0, %v1946_v46 }
 0x1db   : > { %v1966_v29 = vpop.permute.xlu0 %1965 }
 0x1dc   : > { %v2031_v40 = vmul.f32 %v4121_v0, %v1966_v29  ;;  %v4202_v37 = vadd.f32 %v2039_v49, %v1918_v14  ;;  %v4222_v14 = vld [vmem:[%s4423_s7] ss:$0 sm:$0xff]  ;;  %v2050_v39 = vadd.f32 %v2026_v13, %v4087_v24 }
 0x1de   : > { %v4205_v9 = vadd.f32 %v2031_v40, %v4054_v2 }
 0x1e1   : > { %v1958_v61 = vpop.permute.xlu1 %1957  ;;  %v2010_v63 = vpop.permute.xlu2 %2009 }
 0x1e2   : > { %v2042_v19 = vmul.f32 %v4121_v0, %v2010_v63  ;;  %v2029_v29 = vmul.f32 %v4121_v0, %v1958_v61 }
 0x1e3   : > { %v1978_v50 = vpop.permute.xlu0 %1977 }
 0x1e4   : > { %v2034_v27 = vmul.f32 %v4121_v0, %v1978_v50  ;;  %v4209_v55 = vadd.f32 %v2042_v19, %v1921_v52  ;;  %v2053_v50 = vadd.f32 %v2029_v29, %v4102_v8 }
 0x1e6   : > { %v4212_v57 = vadd.f32 %v2034_v27, %v4068_v53 }
 0x1e9   : > { %v1970_v4 = vpop.permute.xlu1 %1969 }
 0x1ea   : > { %v2071_v2 = vpop.permute.xlu2 %2070 }
 0x1eb   : > { %v1990_v16 = vpop.permute.xlu0 %1989  ;;  %v2166_v51 = vmul.f32 %v4216_v20, %v2071_v2 }
 0x1ec   : > { %v2037_v53 = vmul.f32 %v4121_v0, %v1990_v16 }
 0x1ed   : > { %v2190_v38 = vadd.f32 %v2166_v51, %v2045_v42  ;;  %v2032_v42 = vmul.f32 %v4121_v0, %v1970_v4 }
 0x1ee   : > { %v4232_v31 = vadd.f32 %v2037_v53, %v4085_v45 }
 0x1ef   : > { %v2217_v41 = vmul.f32 %v4222_v14, %v2190_v38 }
 0x1f1   : > { %v1982_v25 = vpop.permute.xlu1 %1981  ;;  %v2244_v60 = vadd.f32 %v4229_v23, %v2217_v41  ;;  %v2056_v41 = vadd.f32 %v2032_v42, %v4118_v33 }
 0x1f2   : > { %v2083_v32 = vpop.permute.xlu2 %2082 }
 0x1f3   : > { %v2002_v52 = vpop.permute.xlu0 %2001  ;;  %v2268_v10 = vmax.f32 %v2244_v60, 0.0  ;;  %v2169_v12 = vmul.f32 %v4216_v20, %v2083_v32 }
 0x1f4   : > { %v2040_v54 = vmul.f32 %v4121_v0, %v2002_v52 }
 0x1f5   : > { %2293 = vst.msk [vmem:[%s2741_s27 - $0x7] sm:$0x80] %vm2292_vm3, %v2268_v10  ;;  %v2193_v45 = vadd.f32 %v2169_v12, %v2048_v7  ;;  %v2035_v12 = vmul.f32 %v4121_v0, %v1982_v25 }
 0x1f6   : > { %v4243_v6 = vadd.f32 %v2040_v54, %v4100_v43 }
 0x1f7   : > { %v2220_v62 = vmul.f32 %v4222_v14, %v2193_v45 }
 0x1f9   : > { %v4247_v3 = vpop.permute.xlu1 %1993  ;;  %v2247_v58 = vadd.f32 %v4229_v23, %v2220_v62  ;;  %v2059_v62 = vadd.f32 %v2035_v12, %v4136_v47 }
 0x1fa   : > { %v2091_v11 = vpop.permute.xlu2 %2090 }
 0x1fb   : > { %v2014_v15 = vpop.permute.xlu0 %2013  ;;  %v2271_v44 = vmax.f32 %v2247_v58, 0.0  ;;  %v2171_v28 = vmul.f32 %v4216_v20, %v2091_v11 }
 0x1fc   : > { %v2043_v49 = vmul.f32 %v4121_v0, %v2014_v15 }
 0x1fd   : > { %2298 = vst.msk [vmem:[%s2741_s27 + $0x9] sm:$0x80] %vm2292_vm3, %v2271_v44  ;;  %v2195_v43 = vadd.f32 %v2171_v28, %v2050_v39 }
 0x1fe   : > { %v4256_v46 = vadd.f32 %v2043_v49, %v4116_v30 }
 0x1ff   : > { %v2222_v40 = vmul.f32 %v4222_v14, %v2195_v43 }
 0x201   : > { %v4260_v63 = vpop.permute.xlu1 %2005  ;;  %v2249_v24 = vadd.f32 %v4229_v23, %v2222_v40 }
 0x202   : > { %v2103_v19 = vpop.permute.xlu2 %2102 }
 0x203   : > { %v2273_v27 = vmax.f32 %v2249_v24, 0.0  ;;  %v2174_v5 = vmul.f32 %v4216_v20, %v2103_v19  ;;  %v2038_v19 = vmul.f32 %v4121_v0, %v4247_v3 }
 0x204   : > { %v2075_v2 = vpop.permute.xlu0 %2074 }
 0x205   : > { %2300 = vst.msk [vmem:[%s2741_s27 + $0x19] sm:$0x7f] %vm2296_vm4, %v2273_v27  ;;  %v2167_v30 = vmul.f32 %v4216_v20, %v2075_v2  ;;  %v2198_v61 = vadd.f32 %v2174_v5, %v2053_v50 }
 0x207   : > { %v2191_v16 = vadd.f32 %v2167_v30, %v4134_v26  ;;  %v2225_v51 = vmul.f32 %v4222_v14, %v2198_v61 }
 0x209   : > { %v2218_v53 = vmul.f32 %v4222_v14, %v2191_v16  ;;  %v4272_v8 = vpop.permute.xlu1 %2017  ;;  %v2252_v38 = vadd.f32 %v4229_v23, %v2225_v51  ;;  %v2062_v16 = vadd.f32 %v2038_v19, %v4151_v22 }
 0x20a   : > { %v2115_v21 = vpop.permute.xlu2 %2114 }
 0x20b   : > { %v2245_v60 = vadd.f32 %v4229_v23, %v2218_v53  ;;  %v2276_v32 = vmax.f32 %v2252_v38, 0.0  ;;  %v2177_v7 = vmul.f32 %v4216_v20, %v2115_v21 }
 0x20c   : > { %v2095_v4 = vpop.permute.xlu0 %2094 }
 0x20d   : > { %v2269_v26 = vmax.f32 %v2245_v60, 0.0  ;;  %2303 = vst.msk [vmem:[%s2741_s27 + $0x29] sm:$0x7f] %vm2296_vm4, %v2276_v32  ;;  %v2172_v52 = vmul.f32 %v4216_v20, %v2095_v4  ;;  %v2201_v10 = vadd.f32 %v2177_v7, %v2056_v41  ;;  %v2041_v41 = vmul.f32 %v4121_v0, %v4260_v63 }
 0x20f   : > { %2295 = vst.msk [vmem:[%s2741_s27 + $0x1] sm:$0xff] %vm2294_vm5, %v2269_v26  ;;  %v2196_v33 = vadd.f32 %v2172_v52, %v4163_v59  ;;  %v2228_v54 = vmul.f32 %v4222_v14, %v2201_v10  ;;  %v2065_v26 = vadd.f32 %v2041_v41, %v4165_v18 }
 0x211   : > { %v2223_v45 = vmul.f32 %v4222_v14, %v2196_v33  ;;  %v2255_v13 = vadd.f32 %v4229_v23, %v2228_v54 }
 0x212   : > { %v2079_v58 = vpop.permute.xlu1 %2078  ;;  %v2127_v11 = vpop.permute.xlu2 %2126 }
 0x213   : > { %v2250_v39 = vadd.f32 %v4229_v23, %v2223_v45  ;;  %v2279_v15 = vmax.f32 %v2255_v13, 0.0  ;;  %v2168_v25 = vmul.f32 %v4216_v20, %v2079_v58  ;;  %v2180_v44 = vmul.f32 %v4216_v20, %v2127_v11 }
 0x214   : > { %v2107_v28 = vpop.permute.xlu0 %2106 }
 0x215   : > { %v2274_v59 = vmax.f32 %v2250_v39, 0.0  ;;  %2306 = vst.msk [vmem:[%s2741_s27 + $0x39] sm:$0x7f] %vm2296_vm4, %v2279_v15  ;;  %v2192_v49 = vadd.f32 %v2168_v25, %v4188_v35  ;;  %v2175_v43 = vmul.f32 %v4216_v20, %v2107_v28  ;;  %v2204_v29 = vadd.f32 %v2180_v44, %v2059_v62 }
 0x216   : > { %v2044_v44 = vmul.f32 %v4121_v0, %v4272_v8 }
 0x217   : > { %2301 = vst.msk [vmem:[%s2741_s27 + $0x19] sm:$0x80] %vm2292_vm3, %v2274_v59  ;;  %v2219_v47 = vmul.f32 %v4222_v14, %v2192_v49  ;;  %v2199_v40 = vadd.f32 %v2175_v43, %v4177_v56  ;;  %v2231_v24 = vmul.f32 %v4222_v14, %v2204_v29 }
 0x219   : > { %v2246_v50 = vadd.f32 %v4229_v23, %v2219_v47  ;;  %v2226_v27 = vmul.f32 %v4222_v14, %v2199_v40  ;;  %v2258_v35 = vadd.f32 %v4229_v23, %v2231_v24  ;;  %v2068_v24 = vadd.f32 %v2044_v44, %v4179_v1 }
 0x21a   : > { %v2087_v5 = vpop.permute.xlu1 %2086  ;;  %v2139_v2 = vpop.permute.xlu2 %2138 }
 0x21b   : > { %v2270_v30 = vmax.f32 %v2246_v50, 0.0  ;;  %v2253_v61 = vadd.f32 %v4229_v23, %v2226_v27  ;;  %v2282_v42 = vmax.f32 %v2258_v35, 0.0  ;;  %v2170_v56 = vmul.f32 %v4216_v20, %v2087_v5 }
 0x21c   : > { %v2119_v51 = vpop.permute.xlu0 %2118  ;;  %v2183_v3 = vmul.f32 %v4216_v20, %v2139_v2 }
 0x21d   : > { %2297 = vst.msk [vmem:[%s2741_s27 + $0x9] sm:$0x7f] %vm2296_vm4, %v2270_v30  ;;  %v2277_v53 = vmax.f32 %v2253_v61, 0.0  ;;  %v2194_v38 = vadd.f32 %v2170_v56, %v4149_v36  ;;  %v2178_v21 = vmul.f32 %v4216_v20, %v2119_v51 }
 0x21e   : > { %2309 = vst.msk [vmem:[%s2741_s27 + $0x49] sm:$0x7f] %vm2296_vm4, %v2282_v42  ;;  %v2207_v60 = vadd.f32 %v2183_v3, %v2062_v16 }
 0x21f   : > { %2304 = vst.msk [vmem:[%s2741_s27 + $0x29] sm:$0x80] %vm2292_vm3, %v2277_v53  ;;  %v2221_v22 = vmul.f32 %v4222_v14, %v2194_v38  ;;  %v2202_v32 = vadd.f32 %v2178_v21, %v4185_v17 }
 0x220   : > { %v2234_v7 = vmul.f32 %v4222_v14, %v2207_v60 }
 0x221   : > { %v2248_v4 = vadd.f32 %v4229_v23, %v2221_v22  ;;  %v2229_v36 = vmul.f32 %v4222_v14, %v2202_v32 }
 0x222   : > { %v2261_v63 = vadd.f32 %v4229_v23, %v2234_v7  ;;  %v2099_v52 = vpop.permute.xlu1 %2098  ;;  %v2151_v10 = vpop.permute.xlu2 %2150 }
 0x223   : > { %v2272_v12 = vmax.f32 %v2248_v4, 0.0  ;;  %v2256_v33 = vadd.f32 %v4229_v23, %v2229_v36  ;;  %v2173_v54 = vmul.f32 %v4216_v20, %v2099_v52  ;;  %v2186_v17 = vmul.f32 %v4216_v20, %v2151_v10 }
 0x224   : > { %v2285_v45 = vmax.f32 %v2261_v63, 0.0  ;;  %v2131_v13 = vpop.permute.xlu0 %2130 }
 0x225   : > { %2299 = vst.msk [vmem:[%s2741_s27 + $0x11] sm:$0xff] %vm2294_vm5, %v2272_v12  ;;  %v2280_v62 = vmax.f32 %v2256_v33, 0.0  ;;  %v2197_v58 = vadd.f32 %v2173_v54, %v4197_v48  ;;  %v2181_v18 = vmul.f32 %v4216_v20, %v2131_v13  ;;  %v2210_v11 = vadd.f32 %v2186_v17, %v2065_v26 }
 0x226   : > { %2312 = vst.msk [vmem:[%s2741_s27 + $0x59] sm:$0x7f] %vm2296_vm4, %v2285_v45 }
 0x227   : > { %2307 = vst.msk [vmem:[%s2741_s27 + $0x39] sm:$0x80] %vm2292_vm3, %v2280_v62  ;;  %v2224_v39 = vmul.f32 %v4222_v14, %v2197_v58  ;;  %v2205_v15 = vadd.f32 %v2181_v18, %v4194_v34  ;;  %v2237_v25 = vmul.f32 %v4222_v14, %v2210_v11 }
 0x229   : > { %v2251_v28 = vadd.f32 %v4229_v23, %v2224_v39  ;;  %v2232_v48 = vmul.f32 %v4222_v14, %v2205_v15  ;;  %v2264_v59 = vadd.f32 %v4229_v23, %v2237_v25 }
 0x22a   : > { %v2111_v49 = vpop.permute.xlu1 %2110  ;;  %v2163_v43 = vpop.permute.xlu2 %2162 }
 0x22b   : > { %v2275_v29 = vmax.f32 %v2251_v28, 0.0  ;;  %v2259_v47 = vadd.f32 %v4229_v23, %v2232_v48  ;;  %v2288_v40 = vmax.f32 %v2264_v59, 0.0  ;;  %v2176_v34 = vmul.f32 %v4216_v20, %v2111_v49 }
 0x22c   : > { %v2143_v19 = vpop.permute.xlu0 %2142  ;;  %v2189_v0 = vmul.f32 %v4216_v20, %v2163_v43 }
 0x22d   : > { %2302 = vst.msk [vmem:[%s2741_s27 + $0x21] sm:$0xff] %vm2294_vm5, %v2275_v29  ;;  %v2283_v8 = vmax.f32 %v2259_v47, 0.0  ;;  %v2200_v50 = vadd.f32 %v2176_v34, %v4205_v9  ;;  %v2184_v27 = vmul.f32 %v4216_v20, %v2143_v19 }
 0x22e   : > { %2315 = vst.msk [vmem:[%s2741_s27 + $0x69] sm:$0x7f] %vm2296_vm4, %v2288_v40  ;;  %v2213_v35 = vadd.f32 %v2189_v0, %v2068_v24 }
 0x22f   : > { %2310 = vst.msk [vmem:[%s2741_s27 + $0x49] sm:$0x80] %vm2292_vm3, %v2283_v8  ;;  %v2227_v5 = vmul.f32 %v4222_v14, %v2200_v50  ;;  %v2208_v1 = vadd.f32 %v2184_v27, %v4202_v37 }
 0x230   : > { %v2240_v2 = vmul.f32 %v4222_v14, %v2213_v35 }
 0x231   : > { %v2254_v30 = vadd.f32 %v4229_v23, %v2227_v5  ;;  %v2235_v9 = vmul.f32 %v4222_v14, %v2208_v1 }
 0x232   : > { %v2267_v61 = vadd.f32 %v4229_v23, %v2240_v2  ;;  %v2123_v42 = vpop.permute.xlu1 %2122 }
 0x233   : > { %v2278_v56 = vmax.f32 %v2254_v30, 0.0  ;;  %v2262_v16 = vadd.f32 %v4229_v23, %v2235_v9  ;;  %v2179_v51 = vmul.f32 %v4216_v20, %v2123_v42 }
 0x234   : > { %v2291_v3 = vmax.f32 %v2267_v61, 0.0  ;;  %v2155_v53 = vpop.permute.xlu0 %2154 }
 0x235   : > { %2305 = vst.msk [vmem:[%s2741_s27 + $0x31] sm:$0xff] %vm2294_vm5, %v2278_v56  ;;  %v2286_v37 = vmax.f32 %v2262_v16, 0.0  ;;  %v2203_v38 = vadd.f32 %v2179_v51, %v4212_v57  ;;  %v2187_v21 = vmul.f32 %v4216_v20, %v2155_v53 }
 0x236   : > { %2318 = vst.msk [vmem:[%s2741_s27 + $0x79] sm:$0x7f] %vm2296_vm4, %v2291_v3 }
 0x237   : > { %2313 = vst.msk [vmem:[%s2741_s27 + $0x59] sm:$0x80] %vm2292_vm3, %v2286_v37  ;;  %v2230_v41 = vmul.f32 %v4222_v14, %v2203_v38  ;;  %v2211_v60 = vadd.f32 %v2187_v21, %v4209_v55 }
 0x239   : > { %v2257_v22 = vadd.f32 %v4229_v23, %v2230_v41  ;;  %v2238_v32 = vmul.f32 %v4222_v14, %v2211_v60 }
 0x23a   : > { %v2135_v7 = vpop.permute.xlu1 %2134 }
 0x23b   : > { %v2281_v4 = vmax.f32 %v2257_v22, 0.0  ;;  %v2265_v36 = vadd.f32 %v4229_v23, %v2238_v32  ;;  %v2182_v57 = vmul.f32 %v4216_v20, %v2135_v7 }
 0x23d   : > { %2308 = vst.msk [vmem:[%s2741_s27 + $0x41] sm:$0xff] %vm2294_vm5, %v2281_v4  ;;  %v2289_v26 = vmax.f32 %v2265_v36, 0.0  ;;  %v2206_v63 = vadd.f32 %v2182_v57, %v4232_v31 }
 0x23f   : > { %2316 = vst.msk [vmem:[%s2741_s27 + $0x69] sm:$0x80] %vm2292_vm3, %v2289_v26  ;;  %v2233_v55 = vmul.f32 %v4222_v14, %v2206_v63 }
 0x241   : > { %v2260_v52 = vadd.f32 %v4229_v23, %v2233_v55 }
 0x242   : > { %v2147_v10 = vpop.permute.xlu1 %2146 }
 0x243   : > { %v2284_v12 = vmax.f32 %v2260_v52, 0.0  ;;  %v2185_v33 = vmul.f32 %v4216_v20, %v2147_v10 }
 0x245   : > { %2311 = vst.msk [vmem:[%s2741_s27 + $0x51] sm:$0xff] %vm2294_vm5, %v2284_v12  ;;  %v2209_v54 = vadd.f32 %v2185_v33, %v4243_v6 }
 0x247   : > { %v2236_v17 = vmul.f32 %v4222_v14, %v2209_v54 }
 0x249   : > { %v2263_v45 = vadd.f32 %v4229_v23, %v2236_v17 }
 0x24a   : > { %v2159_v31 = vpop.permute.xlu1 %2158 }
 0x24b   : > { %v2287_v13 = vmax.f32 %v2263_v45, 0.0  ;;  %v2188_v62 = vmul.f32 %v4216_v20, %v2159_v31 }
 0x24d   : > { %2314 = vst.msk [vmem:[%s2741_s27 + $0x61] sm:$0xff] %vm2294_vm5, %v2287_v13  ;;  %v2212_v58 = vadd.f32 %v2188_v62, %v4256_v46 }
 0x24f   : > { %v2239_v18 = vmul.f32 %v4222_v14, %v2212_v58 }
 0x251   : > { %v2266_v11 = vadd.f32 %v4229_v23, %v2239_v18 }
 0x253   : > { %v2290_v39 = vmax.f32 %v2266_v11, 0.0 }
 0x255   : > { %2317 = vst.msk [vmem:[%s2741_s27 + $0x71] sm:$0xff] %vm2294_vm5, %v2290_v39 }
 0x256 PF: > { %s19_s13 = sadd.s32 1, %s2631_s13   ;;  %s4597_s30 = smov %s2623_s11 }
 0x257   : > { %p16_p0 = scmp.ge.s32.totalorder %s19_s13, 6   ;;  %s4598_s10 = smov %s2627_s12 }
 0x258   : > { %s4599_s11 = smov %s4602_s14  ;;  %s4600_s12 = smov %s4606_s15 }
 0x259   :  { %18 = sbr.rel (!%p16_p0) target bundleno = 3 (0x3), region = 111 }

</bundles_post_ra>
